<compile_context>
chip_gen: v5e
topology: v5e:2x2
jax: 0.10.0
libtpu: 0.0.40
codegen_flags: <defaults>
</compile_context>

<pallas_src>
import jax
import jax.numpy as jnp
from jax.experimental import pallas as pl
from jax.experimental.pallas import tpu as pltpu

MAX_LENGTH = 10
HIDDEN = 32
OUTPUT_SIZE = 20
LANE = 128          # TPU lane width; attention-length and vocab axes padded to this
NEG = -1e30


def _attn_decoder_kernel(ids_ref,        # SMEM (T,) int32   scalar-prefetched token ids
                         h0_ref,         # (1, H)            initial hidden
                         enc_ref,        # (LANE, H)         encoder outputs, zero-padded rows
                         emb_ref,        # (V, H)            embedding table
                         attn_we_ref,    # (H, LANE)         emb half of attn weight (0-pad cols)
                         attn_b_ref,     # (1, LANE)         pad lanes = -1e30
                         comb_we_ref,    # (H, H)            emb half of attn_combine
                         comb_wa_ref,    # (H, H)            attn_applied half of attn_combine
                         comb_b_ref,     # (1, H)
                         w_h_all_ref,    # (H, 2*LANE)       [Whh_r|Whh_z|Whh_n|pad|attn_w_h(128)]
                         w_ih_all_ref,   # (H, LANE)         [Wih_r|Wih_z|Wih_n|pad]
                         b_gi_ref,       # (1, LANE)         [b_ir+b_hr|b_iz+b_hz|b_in|0]
                         b_hn_ref,       # (1, H)
                         out_w_ref,      # (H, LANE)         0-padded cols
                         out_b_ref,      # (1, LANE)         pad lanes = -1e30
                         logp_ref,       # out (T, LANE)     log-probs (lane-dense)
                         attn_ref,       # out (T, LANE)     attention weights (lane-dense)
                         hfin_ref,       # out (1, H)        final hidden
                         ebuf_ref,       # VMEM scratch (T, H) gathered embeddings
                         hbuf_ref):      # VMEM scratch (T, H) per-step hidden states
    f32 = jnp.float32
    T = ids_ref.shape[0]
    H = h0_ref.shape[1]

    # ---- prologue: gather all T embedding rows (dropout == identity, eval mode) ----
    for t in range(T):
        ebuf_ref[pl.ds(t, 1), :] = emb_ref[pl.ds(ids_ref[t], 1), :]
    E = ebuf_ref[...]                                                     # (T, H)

    # hoisted, batched embedding-side matmuls (out of the serial recurrence)
    attn_e = (jnp.dot(E, attn_we_ref[...], preferred_element_type=f32)
              + attn_b_ref[...])                                          # (T, LANE); pads ~ -1e30
    comb_e = (jnp.dot(E, comb_we_ref[...], preferred_element_type=f32)
              + comb_b_ref[...])                                          # (T, H)

    h = h0_ref[...]                                                       # (1, H)

    # ---- statically-unrolled recurrence (T is static; same effect as
    #      lax.fori_loop(0, T, ..., unroll=True), all indices constant) ----
    for t in range(T):
        # single fused matmul for everything that multiplies h
        hW = jnp.dot(h, w_h_all_ref[...], preferred_element_type=f32)     # (1, 2*LANE)

        # attention softmax over the padded 128-lane row
        scores = attn_e[t:t + 1, :] + hW[:, LANE:2 * LANE]                # (1, LANE)
        m = jnp.max(scores, axis=1, keepdims=True)
        e = jnp.exp(scores - m)                                           # pad lanes underflow to 0
        aw = e * pl.reciprocal(jnp.sum(e, axis=1, keepdims=True), approx=True)
        attn_ref[pl.ds(t, 1), :] = aw                                     # resident output block

        # attn_applied = attn_weights @ encoder_outputs (padded rows are zero)
        attn_applied = jnp.dot(aw, enc_ref[...], preferred_element_type=f32)       # (1, H)

        # attn_combine + relu (emb half precomputed in comb_e)
        x = comb_e[t:t + 1, :] + jnp.dot(attn_applied, comb_wa_ref[...],
                                         preferred_element_type=f32)
        x = jnp.maximum(x, 0.0)

        # single-step GRU, PyTorch gate order (r, z, n); one fused input-side matmul
        gi = jnp.dot(x, w_ih_all_ref[...], preferred_element_type=f32) + b_gi_ref[...]
        r = jax.nn.sigmoid(gi[:, 0 * H:1 * H] + hW[:, 0 * H:1 * H])
        z = jax.nn.sigmoid(gi[:, 1 * H:2 * H] + hW[:, 1 * H:2 * H])
        n = jnp.tanh(gi[:, 2 * H:3 * H] + r * (hW[:, 2 * H:3 * H] + b_hn_ref[...]))
        h = (1.0 - z) * n + z * h                                         # (1, H)
        hbuf_ref[pl.ds(t, 1), :] = h

    hfin_ref[...] = h

    # ---- epilogue: deferred batched output projection + log-softmax ----
    logits = (jnp.dot(hbuf_ref[...], out_w_ref[...], preferred_element_type=f32)
              + out_b_ref[...])                                           # (T, LANE)
    mo = jnp.max(logits, axis=1, keepdims=True)
    lo = logits - mo
    logp_ref[...] = lo - jnp.log(jnp.sum(jnp.exp(lo), axis=1, keepdims=True))


def _pack_params(params):
    """One-time repack of params into kernel-friendly, fused, lane-dense layout."""
    H = params["comb_b"].shape[-1]
    assert 3 * H <= LANE, "gate fusion layout assumes 3*H <= 128"
    f32 = jnp.float32

    def pad_cols(x, width, fill=0.0):
        return jnp.pad(x, ((0, 0), (0, width - x.shape[-1])), constant_values=fill)

    attn_we = pad_cols(params["attn_w"][:H], LANE)                        # (H, LANE)
    attn_wh = pad_cols(params["attn_w"][H:], LANE)                        # (H, LANE)
    attn_b = pad_cols(params["attn_b"], LANE, fill=NEG)                   # (1, LANE)

    comb_we = params["comb_w"][:H]                                        # (H, H)
    comb_wa = params["comb_w"][H:]                                        # (H, H)

    w_ih, w_hh = params["w_ih"], params["w_hh"]                           # (H, 3H) each
    b_ih, b_hh = params["b_ih"], params["b_hh"]                           # (1, 3H) each

    # fused hidden-side weight: [Whh_r | Whh_z | Whh_n | 0 | attn_w_hidden(128)] -> (H, 256)
    w_h_all = jnp.concatenate(
        [w_hh, jnp.zeros((H, LANE - 3 * H), f32), attn_wh], axis=1)       # (H, 2*LANE)
    # fused input-side gate weight: [Wih_r | Wih_z | Wih_n | 0] -> (H, 128)
    w_ih_all = pad_cols(w_ih, LANE)                                       # (H, LANE)
    # fused gi bias: [b_ir+b_hr | b_iz+b_hz | b_in | 0]
    b_gi = jnp.concatenate(
        [b_ih[:, :2 * H] + b_hh[:, :2 * H], b_ih[:, 2 * H:],
         jnp.zeros((1, LANE - 3 * H), f32)], axis=1)                      # (1, LANE)
    b_hn = b_hh[:, 2 * H:]                                                # (1, H)

    out_w = pad_cols(params["out_w"], LANE)                               # (H, LANE)
    out_b = pad_cols(params["out_b"], LANE, fill=NEG)                     # (1, LANE)

    return dict(embedding=params["embedding"], attn_we=attn_we, attn_b=attn_b,
                comb_we=comb_we, comb_wa=comb_wa, comb_b=params["comb_b"],
                w_h_all=w_h_all, w_ih_all=w_ih_all, b_gi=b_gi, b_hn=b_hn,
                out_w=out_w, out_b=out_b)


def attn_decoder_decode(params, token_ids, hidden0, encoder_outputs):
    """Teacher-forced decode of all T steps fused into ONE pallas_call (grid=(1,)).

    token_ids: (T,) int32; hidden0: (1,1,H); encoder_outputs: (L,H).
    Returns (log_probs (T,V), final_hidden (1,1,H), attn_weights (T,L))."""
    H = hidden0.shape[-1]
    L = encoder_outputs.shape[0]
    V = params["out_b"].shape[-1]
    T = token_ids.shape[0]

    p = _pack_params(params)
    enc_pad = jnp.zeros((LANE, H), jnp.float32).at[:L].set(encoder_outputs.astype(jnp.float32))

    inputs = (hidden0.reshape(1, H).astype(jnp.float32), enc_pad, p["embedding"],
              p["attn_we"], p["attn_b"], p["comb_we"], p["comb_wa"], p["comb_b"],
              p["w_h_all"], p["w_ih_all"], p["b_gi"], p["b_hn"],
              p["out_w"], p["out_b"])

    def whole(x):   # resident input: full block, constant block index => fetched once
        nd = x.ndim
        return pl.BlockSpec(x.shape, lambda i, ids, _nd=nd: (0,) * _nd)

    grid_spec = pltpu.PrefetchScalarGridSpec(
        num_scalar_prefetch=1,
        grid=(1,),                                   # whole decode in one kernel invocation
        in_specs=[whole(x) for x in inputs],
        out_specs=(
            pl.BlockSpec((T, LANE), lambda i, ids: (0, 0)),   # log-probs (resident)
            pl.BlockSpec((T, LANE), lambda i, ids: (0, 0)),   # attn weights (resident)
            pl.BlockSpec((1, H), lambda i, ids: (0, 0)),      # final hidden
        ),
        scratch_shapes=[pltpu.VMEM((T, H), jnp.float32),      # gathered embeddings
                        pltpu.VMEM((T, H), jnp.float32)],     # per-step hidden states
    )

    logp_pad, attn_pad, h_fin = pl.pallas_call(
        _attn_decoder_kernel,
        grid_spec=grid_spec,
        out_shape=(
            jax.ShapeDtypeStruct((T, LANE), jnp.float32),
            jax.ShapeDtypeStruct((T, LANE), jnp.float32),
            jax.ShapeDtypeStruct((1, H), jnp.float32),
        ),
        compiler_params=pltpu.CompilerParams(
            dimension_semantics=("arbitrary",)),
    )(token_ids.astype(jnp.int32), *inputs)

    return logp_pad[:, :V], h_fin.reshape(1, 1, H), attn_pad[:, :L]


def attn_decoder_forward(params, input_idx, hidden, encoder_outputs):
    """Single decode step == AttnDecoderRNN.forward (eval mode)."""
    logp, h_new, attn = attn_decoder_decode(
        params, input_idx.reshape(-1)[:1], hidden, encoder_outputs)
    return logp, h_new, attn


# ----------------------- pure-JAX reference -----------------------

def _reference_step(params, idx, h, encoder_outputs):
    H = h.shape[-1]
    embedded = params["embedding"][idx].reshape(1, H)
    scores = jnp.concatenate([embedded, h], 1) @ params["attn_w"] + params["attn_b"]
    attn_w = jax.nn.softmax(scores, axis=1)
    attn_applied = attn_w @ encoder_outputs
    x = jnp.concatenate([embedded, attn_applied], 1) @ params["comb_w"] + params["comb_b"]
    x = jnp.maximum(x, 0.0)
    gi = x @ params["w_ih"] + params["b_ih"]
    gh = h @ params["w_hh"] + params["b_hh"]
    r = jax.nn.sigmoid(gi[:, :H] + gh[:, :H])
    z = jax.nn.sigmoid(gi[:, H:2 * H] + gh[:, H:2 * H])
    n = jnp.tanh(gi[:, 2 * H:] + r * gh[:, 2 * H:])
    h_new = (1.0 - z) * n + z * h
    logits = h_new @ params["out_w"] + params["out_b"]
    return jax.nn.log_softmax(logits, axis=1), h_new, attn_w


def _reference_decode(params, token_ids, hidden0, encoder_outputs):
    h = hidden0.reshape(1, -1)
    logps, attns = [], []
    for i in range(token_ids.shape[0]):
        lp, h, aw = _reference_step(params, token_ids[i], h, encoder_outputs)
        logps.append(lp)
        attns.append(aw)
    return jnp.concatenate(logps, 0), h.reshape(1, 1, -1), jnp.concatenate(attns, 0)


def init_params(key, hidden_size, output_size, max_length):
    ks = jax.random.split(key, 10)
    s = 0.1
    f32 = jnp.float32
    return {
        "embedding": s * jax.random.normal(ks[0], (output_size, hidden_size), f32),
        "attn_w":    s * jax.random.normal(ks[1], (2 * hidden_size, max_length), f32),
        "attn_b":    s * jax.random.normal(ks[2], (1, max_length), f32),
        "comb_w":    s * jax.random.normal(ks[3], (2 * hidden_size, hidden_size), f32),
        "comb_b":    s * jax.random.normal(ks[4], (1, hidden_size), f32),
        "w_ih":      s * jax.random.normal(ks[5], (hidden_size, 3 * hidden_size), f32),
        "w_hh":      s * jax.random.normal(ks[6], (hidden_size, 3 * hidden_size), f32),
        "b_ih":      s * jax.random.normal(ks[7], (1, 3 * hidden_size), f32),
        "b_hh":      s * jax.random.normal(ks[8], (1, 3 * hidden_size), f32),
        "out_w":     s * jax.random.normal(ks[9], (hidden_size, output_size), f32),
        "out_b":     jnp.zeros((1, output_size), f32),
    }


if __name__ == "__main__":
    key = jax.random.PRNGKey(0)
    k_par, k_hid, k_enc = jax.random.split(key, 3)

    params = init_params(k_par, HIDDEN, OUTPUT_SIZE, MAX_LENGTH)
    hidden0 = 0.1 * jax.random.normal(k_hid, (1, 1, HIDDEN), jnp.float32)
    encoder_outputs = 0.1 * jax.random.normal(k_enc, (MAX_LENGTH, HIDDEN), jnp.float32)

    # ---- fused multi-step decode: one pallas_call for the whole sequence ----
    token_ids = jnp.array([3, 7, 1, 0, 12, 5], dtype=jnp.int32)   # T = 6 teacher-forced steps
    logp, h_fin, attn = attn_decoder_decode(params, token_ids, hidden0, encoder_outputs)
    jax.block_until_ready((logp, h_fin, attn))

    logp_r, h_r, attn_r = _reference_decode(params, token_ids, hidden0, encoder_outputs)
    # approx reciprocal in the attention softmax -> slightly relaxed attn tolerance
    assert jnp.allclose(logp, logp_r, atol=2e-4), "multi-step log-probs mismatch"
    assert jnp.allclose(h_fin, h_r, atol=2e-4), "multi-step hidden mismatch"
    assert jnp.allclose(attn, attn_r, atol=5e-4), "multi-step attn weights mismatch"

    # ---- single step == AttnDecoderRNN.forward ----
    one = jnp.array([3], dtype=jnp.int32)
    logp1, h1, attn1 = attn_decoder_forward(params, one, hidden0, encoder_outputs)
    jax.block_until_ready((logp1, h1, attn1))

    logp1_r, h1_r, attn1_r = _reference_decode(params, one, hidden0, encoder_outputs)
    assert jnp.allclose(logp1, logp1_r, atol=2e-4), "single-step log-probs mismatch"
    assert jnp.allclose(h1, h1_r, atol=2e-4), "single-step hidden mismatch"
    assert jnp.allclose(attn1, attn1_r, atol=5e-4), "single-step attn weights mismatch"

    print("KERNEL_OK")
</pallas_src>

<mosaic_0001>
module attributes {stable_mosaic.version = 11 : i64} {
  func.func @_attn_decoder_kernel(%arg0: i32, %arg1: memref<6xi32, #tpu.memory_space<smem>>, %arg2: memref<1x32xf32, #tpu.memory_space<vmem>>, %arg3: memref<128x32xf32, #tpu.memory_space<vmem>>, %arg4: memref<20x32xf32, #tpu.memory_space<vmem>>, %arg5: memref<32x128xf32, #tpu.memory_space<vmem>>, %arg6: memref<1x128xf32, #tpu.memory_space<vmem>>, %arg7: memref<32x32xf32, #tpu.memory_space<vmem>>, %arg8: memref<32x32xf32, #tpu.memory_space<vmem>>, %arg9: memref<1x32xf32, #tpu.memory_space<vmem>>, %arg10: memref<32x256xf32, #tpu.memory_space<vmem>>, %arg11: memref<32x128xf32, #tpu.memory_space<vmem>>, %arg12: memref<1x128xf32, #tpu.memory_space<vmem>>, %arg13: memref<1x32xf32, #tpu.memory_space<vmem>>, %arg14: memref<32x128xf32, #tpu.memory_space<vmem>>, %arg15: memref<1x128xf32, #tpu.memory_space<vmem>>, %arg16: memref<6x128xf32, #tpu.memory_space<vmem>>, %arg17: memref<6x128xf32, #tpu.memory_space<vmem>>, %arg18: memref<1x32xf32, #tpu.memory_space<vmem>>, %arg19: memref<6x32xf32, #tpu.memory_space<vmem>>, %arg20: memref<6x32xf32, #tpu.memory_space<vmem>>) attributes {dimension_semantics = [#tpu.dimension_semantics<arbitrary>], iteration_bounds = array<i64: 1>, scalar_prefetch = 1 : i64, scratch_operands = 2 : i64, tpu.core_type = #tpu.core_type<tc>, window_params = [{pipeline_mode = #tpu.pipeline_mode<synchronous>, transform_indices = @transform_0, window_bounds = array<i64: 1, 32>}, {pipeline_mode = #tpu.pipeline_mode<synchronous>, transform_indices = @transform_1, window_bounds = array<i64: 128, 32>}, {pipeline_mode = #tpu.pipeline_mode<synchronous>, transform_indices = @transform_2, window_bounds = array<i64: 20, 32>}, {pipeline_mode = #tpu.pipeline_mode<synchronous>, transform_indices = @transform_3, window_bounds = array<i64: 32, 128>}, {pipeline_mode = #tpu.pipeline_mode<synchronous>, transform_indices = @transform_4, window_bounds = array<i64: 1, 128>}, {pipeline_mode = #tpu.pipeline_mode<synchronous>, transform_indices = @transform_5, window_bounds = array<i64: 32, 32>}, {pipeline_mode = #tpu.pipeline_mode<synchronous>, transform_indices = @transform_6, window_bounds = array<i64: 32, 32>}, {pipeline_mode = #tpu.pipeline_mode<synchronous>, transform_indices = @transform_7, window_bounds = array<i64: 1, 32>}, {pipeline_mode = #tpu.pipeline_mode<synchronous>, transform_indices = @transform_8, window_bounds = array<i64: 32, 256>}, {pipeline_mode = #tpu.pipeline_mode<synchronous>, transform_indices = @transform_9, window_bounds = array<i64: 32, 128>}, {pipeline_mode = #tpu.pipeline_mode<synchronous>, transform_indices = @transform_10, window_bounds = array<i64: 1, 128>}, {pipeline_mode = #tpu.pipeline_mode<synchronous>, transform_indices = @transform_11, window_bounds = array<i64: 1, 32>}, {pipeline_mode = #tpu.pipeline_mode<synchronous>, transform_indices = @transform_12, window_bounds = array<i64: 32, 128>}, {pipeline_mode = #tpu.pipeline_mode<synchronous>, transform_indices = @transform_13, window_bounds = array<i64: 1, 128>}, {pipeline_mode = #tpu.pipeline_mode<synchronous>, transform_indices = @transform_14, window_bounds = array<i64: 6, 128>}, {pipeline_mode = #tpu.pipeline_mode<synchronous>, transform_indices = @transform_15, window_bounds = array<i64: 6, 128>}, {pipeline_mode = #tpu.pipeline_mode<synchronous>, transform_indices = @transform_16, window_bounds = array<i64: 1, 32>}]} {
    %c0 = arith.constant 0 : index
    %0 = memref.load %arg1[%c0] : memref<6xi32, #tpu.memory_space<smem>>
    %1 = arith.index_cast %0 : i32 to index
    %c0_0 = arith.constant 0 : index
    %2 = vector.load %arg4[%1, %c0_0] : memref<20x32xf32, #tpu.memory_space<vmem>>, vector<1x32xf32>
    %c0_1 = arith.constant 0 : index
    %c0_2 = arith.constant 0 : index
    %3 = vector.load %arg19[%c0_1, %c0_2] : memref<6x32xf32, #tpu.memory_space<vmem>>, vector<1x32xf32>
    tpu.vector_store %arg19[%c0_1, %c0_2], %2 {strides = array<i32>} : memref<6x32xf32, #tpu.memory_space<vmem>>, vector<1x32xf32>,
    %c1 = arith.constant 1 : index
    %4 = memref.load %arg1[%c1] : memref<6xi32, #tpu.memory_space<smem>>
    %5 = arith.index_cast %4 : i32 to index
    %c0_3 = arith.constant 0 : index
    %6 = vector.load %arg4[%5, %c0_3] : memref<20x32xf32, #tpu.memory_space<vmem>>, vector<1x32xf32>
    %c1_4 = arith.constant 1 : index
    %c0_5 = arith.constant 0 : index
    %7 = vector.load %arg19[%c1_4, %c0_5] : memref<6x32xf32, #tpu.memory_space<vmem>>, vector<1x32xf32>
    tpu.vector_store %arg19[%c1_4, %c0_5], %6 {strides = array<i32>} : memref<6x32xf32, #tpu.memory_space<vmem>>, vector<1x32xf32>,
    %c2 = arith.constant 2 : index
    %8 = memref.load %arg1[%c2] : memref<6xi32, #tpu.memory_space<smem>>
    %9 = arith.index_cast %8 : i32 to index
    %c0_6 = arith.constant 0 : index
    %10 = vector.load %arg4[%9, %c0_6] : memref<20x32xf32, #tpu.memory_space<vmem>>, vector<1x32xf32>
    %c2_7 = arith.constant 2 : index
    %c0_8 = arith.constant 0 : index
    %11 = vector.load %arg19[%c2_7, %c0_8] : memref<6x32xf32, #tpu.memory_space<vmem>>, vector<1x32xf32>
    tpu.vector_store %arg19[%c2_7, %c0_8], %10 {strides = array<i32>} : memref<6x32xf32, #tpu.memory_space<vmem>>, vector<1x32xf32>,
    %c3 = arith.constant 3 : index
    %12 = memref.load %arg1[%c3] : memref<6xi32, #tpu.memory_space<smem>>
    %13 = arith.index_cast %12 : i32 to index
    %c0_9 = arith.constant 0 : index
    %14 = vector.load %arg4[%13, %c0_9] : memref<20x32xf32, #tpu.memory_space<vmem>>, vector<1x32xf32>
    %c3_10 = arith.constant 3 : index
    %c0_11 = arith.constant 0 : index
    %15 = vector.load %arg19[%c3_10, %c0_11] : memref<6x32xf32, #tpu.memory_space<vmem>>, vector<1x32xf32>
    tpu.vector_store %arg19[%c3_10, %c0_11], %14 {strides = array<i32>} : memref<6x32xf32, #tpu.memory_space<vmem>>, vector<1x32xf32>,
    %c4 = arith.constant 4 : index
    %16 = memref.load %arg1[%c4] : memref<6xi32, #tpu.memory_space<smem>>
    %17 = arith.index_cast %16 : i32 to index
    %c0_12 = arith.constant 0 : index
    %18 = vector.load %arg4[%17, %c0_12] : memref<20x32xf32, #tpu.memory_space<vmem>>, vector<1x32xf32>
    %c4_13 = arith.constant 4 : index
    %c0_14 = arith.constant 0 : index
    %19 = vector.load %arg19[%c4_13, %c0_14] : memref<6x32xf32, #tpu.memory_space<vmem>>, vector<1x32xf32>
    tpu.vector_store %arg19[%c4_13, %c0_14], %18 {strides = array<i32>} : memref<6x32xf32, #tpu.memory_space<vmem>>, vector<1x32xf32>,
    %c5 = arith.constant 5 : index
    %20 = memref.load %arg1[%c5] : memref<6xi32, #tpu.memory_space<smem>>
    %21 = arith.index_cast %20 : i32 to index
    %c0_15 = arith.constant 0 : index
    %22 = vector.load %arg4[%21, %c0_15] : memref<20x32xf32, #tpu.memory_space<vmem>>, vector<1x32xf32>
    %c5_16 = arith.constant 5 : index
    %c0_17 = arith.constant 0 : index
    %23 = vector.load %arg19[%c5_16, %c0_17] : memref<6x32xf32, #tpu.memory_space<vmem>>, vector<1x32xf32>
    tpu.vector_store %arg19[%c5_16, %c0_17], %22 {strides = array<i32>} : memref<6x32xf32, #tpu.memory_space<vmem>>, vector<1x32xf32>,
    %c0_18 = arith.constant 0 : index
    %c0_19 = arith.constant 0 : index
    %24 = vector.load %arg19[%c0_18, %c0_19] : memref<6x32xf32, #tpu.memory_space<vmem>>, vector<6x32xf32>
    %c0_20 = arith.constant 0 : index
    %c0_21 = arith.constant 0 : index
    %25 = vector.load %arg5[%c0_20, %c0_21] : memref<32x128xf32, #tpu.memory_space<vmem>>, vector<32x128xf32>
    %cst = arith.constant dense<0.000000e+00> : vector<6x128xf32>
    %26 = tpu.matmul %24, %25, %cst {dimension_numbers = #tpu.dot_dimension_numbers<[1], [0], [0], [1], [0, 0, 1, 1], [], []>} : vector<6x32xf32>, vector<32x128xf32>, vector<6x128xf32> -> vector<6x128xf32>
    %c0_22 = arith.constant 0 : index
    %c0_23 = arith.constant 0 : index
    %27 = vector.load %arg6[%c0_22, %c0_23] : memref<1x128xf32, #tpu.memory_space<vmem>>, vector<1x128xf32>
    %28 = vector.broadcast %27 : vector<1x128xf32> to vector<6x128xf32>
    %29 = arith.addf %26, %28 : vector<6x128xf32>
    %c0_24 = arith.constant 0 : index
    %c0_25 = arith.constant 0 : index
    %30 = vector.load %arg7[%c0_24, %c0_25] : memref<32x32xf32, #tpu.memory_space<vmem>>, vector<32x32xf32>
    %cst_26 = arith.constant dense<0.000000e+00> : vector<6x32xf32>
    %31 = tpu.matmul %24, %30, %cst_26 {dimension_numbers = #tpu.dot_dimension_numbers<[1], [0], [0], [1], [0, 0, 1, 1], [], []>} : vector<6x32xf32>, vector<32x32xf32>, vector<6x32xf32> -> vector<6x32xf32>
    %c0_27 = arith.constant 0 : index
    %c0_28 = arith.constant 0 : index
    %32 = vector.load %arg9[%c0_27, %c0_28] : memref<1x32xf32, #tpu.memory_space<vmem>>, vector<1x32xf32>
    %33 = vector.broadcast %32 : vector<1x32xf32> to vector<6x32xf32>
    %34 = arith.addf %31, %33 : vector<6x32xf32>
    %c0_29 = arith.constant 0 : index
    %c0_30 = arith.constant 0 : index
    %35 = vector.load %arg2[%c0_29, %c0_30] : memref<1x32xf32, #tpu.memory_space<vmem>>, vector<1x32xf32>
    %c0_31 = arith.constant 0 : index
    %c0_32 = arith.constant 0 : index
    %36 = vector.load %arg10[%c0_31, %c0_32] : memref<32x256xf32, #tpu.memory_space<vmem>>, vector<32x256xf32>
    %cst_33 = arith.constant dense<0.000000e+00> : vector<1x256xf32>
    %37 = tpu.matmul %35, %36, %cst_33 {dimension_numbers = #tpu.dot_dimension_numbers<[1], [0], [0], [1], [0, 0, 1, 1], [], []>} : vector<1x32xf32>, vector<32x256xf32>, vector<1x256xf32> -> vector<1x256xf32>
    %38 = vector.extract_strided_slice %29 {offsets = [0, 0], sizes = [1, 128], strides = [1, 1]} : vector<6x128xf32> to vector<1x128xf32>
    %39 = vector.extract_strided_slice %37 {offsets = [0, 128], sizes = [1, 128], strides = [1, 1]} : vector<1x256xf32> to vector<1x128xf32>
    %40 = arith.addf %38, %39 : vector<1x128xf32>
    %cst_34 = arith.constant dense<0xFF800000> : vector<1xf32>
    %41 = vector.multi_reduction <maximumf>, %40, %cst_34 [1] : vector<1x128xf32> to vector<1xf32>
    %42 = vector.shape_cast %41 : vector<1xf32> to vector<1x1xf32>
    %43 = vector.broadcast %42 : vector<1x1xf32> to vector<1x128xf32>
    %44 = arith.subf %40, %43 : vector<1x128xf32>
    %45 = math.exp %44 : vector<1x128xf32>
    %cst_35 = arith.constant dense<0.000000e+00> : vector<1xf32>
    %46 = vector.multi_reduction <add>, %45, %cst_35 [1] : vector<1x128xf32> to vector<1xf32>
    %47 = vector.shape_cast %46 : vector<1xf32> to vector<1x1xf32>
    %48 = tpu.reciprocal %47 {approx = true} : vector<1x1xf32> -> vector<1x1xf32>
    %49 = vector.broadcast %48 : vector<1x1xf32> to vector<1x128xf32>
    %50 = arith.mulf %45, %49 : vector<1x128xf32>
    %c0_36 = arith.constant 0 : index
    %c0_37 = arith.constant 0 : index
    %51 = vector.load %arg17[%c0_36, %c0_37] : memref<6x128xf32, #tpu.memory_space<vmem>>, vector<1x128xf32>
    tpu.vector_store %arg17[%c0_36, %c0_37], %50 {strides = array<i32>} : memref<6x128xf32, #tpu.memory_space<vmem>>, vector<1x128xf32>,
    %c0_38 = arith.constant 0 : index
    %c0_39 = arith.constant 0 : index
    %52 = vector.load %arg3[%c0_38, %c0_39] : memref<128x32xf32, #tpu.memory_space<vmem>>, vector<128x32xf32>
    %cst_40 = arith.constant dense<0.000000e+00> : vector<1x32xf32>
    %53 = tpu.matmul %50, %52, %cst_40 {dimension_numbers = #tpu.dot_dimension_numbers<[1], [0], [0], [1], [0, 0, 1, 1], [], []>} : vector<1x128xf32>, vector<128x32xf32>, vector<1x32xf32> -> vector<1x32xf32>
    %54 = vector.extract_strided_slice %34 {offsets = [0, 0], sizes = [1, 32], strides = [1, 1]} : vector<6x32xf32> to vector<1x32xf32>
    %c0_41 = arith.constant 0 : index
    %c0_42 = arith.constant 0 : index
    %55 = vector.load %arg8[%c0_41, %c0_42] : memref<32x32xf32, #tpu.memory_space<vmem>>, vector<32x32xf32>
    %cst_43 = arith.constant dense<0.000000e+00> : vector<1x32xf32>
    %56 = tpu.matmul %53, %55, %cst_43 {dimension_numbers = #tpu.dot_dimension_numbers<[1], [0], [0], [1], [0, 0, 1, 1], [], []>} : vector<1x32xf32>, vector<32x32xf32>, vector<1x32xf32> -> vector<1x32xf32>
    %57 = arith.addf %54, %56 : vector<1x32xf32>
    %cst_44 = arith.constant 0.000000e+00 : f32
    %58 = vector.broadcast %cst_44 : f32 to vector<1x32xf32>
    %59 = arith.maximumf %57, %58 : vector<1x32xf32>
    %c0_45 = arith.constant 0 : index
    %c0_46 = arith.constant 0 : index
    %60 = vector.load %arg11[%c0_45, %c0_46] : memref<32x128xf32, #tpu.memory_space<vmem>>, vector<32x128xf32>
    %cst_47 = arith.constant dense<0.000000e+00> : vector<1x128xf32>
    %61 = tpu.matmul %59, %60, %cst_47 {dimension_numbers = #tpu.dot_dimension_numbers<[1], [0], [0], [1], [0, 0, 1, 1], [], []>} : vector<1x32xf32>, vector<32x128xf32>, vector<1x128xf32> -> vector<1x128xf32>
    %c0_48 = arith.constant 0 : index
    %c0_49 = arith.constant 0 : index
    %62 = vector.load %arg12[%c0_48, %c0_49] : memref<1x128xf32, #tpu.memory_space<vmem>>, vector<1x128xf32>
    %63 = arith.addf %61, %62 : vector<1x128xf32>
    %64 = vector.extract_strided_slice %63 {offsets = [0, 0], sizes = [1, 32], strides = [1, 1]} : vector<1x128xf32> to vector<1x32xf32>
    %65 = vector.extract_strided_slice %37 {offsets = [0, 0], sizes = [1, 32], strides = [1, 1]} : vector<1x256xf32> to vector<1x32xf32>
    %66 = arith.addf %64, %65 : vector<1x32xf32>
    %67 = arith.negf %66 : vector<1x32xf32>
    %68 = math.exp %67 : vector<1x32xf32>
    %cst_50 = arith.constant 1.000000e+00 : f32
    %69 = vector.broadcast %cst_50 : f32 to vector<1x32xf32>
    %70 = arith.addf %69, %68 : vector<1x32xf32>
    %71 = arith.divf %69, %70 : vector<1x32xf32>
    %72 = vector.extract_strided_slice %63 {offsets = [0, 32], sizes = [1, 32], strides = [1, 1]} : vector<1x128xf32> to vector<1x32xf32>
    %73 = vector.extract_strided_slice %37 {offsets = [0, 32], sizes = [1, 32], strides = [1, 1]} : vector<1x256xf32> to vector<1x32xf32>
    %74 = arith.addf %72, %73 : vector<1x32xf32>
    %75 = arith.negf %74 : vector<1x32xf32>
    %76 = math.exp %75 : vector<1x32xf32>
    %cst_51 = arith.constant 1.000000e+00 : f32
    %77 = vector.broadcast %cst_51 : f32 to vector<1x32xf32>
    %78 = arith.addf %77, %76 : vector<1x32xf32>
    %79 = arith.divf %77, %78 : vector<1x32xf32>
    %80 = vector.extract_strided_slice %63 {offsets = [0, 64], sizes = [1, 32], strides = [1, 1]} : vector<1x128xf32> to vector<1x32xf32>
    %81 = vector.extract_strided_slice %37 {offsets = [0, 64], sizes = [1, 32], strides = [1, 1]} : vector<1x256xf32> to vector<1x32xf32>
    %c0_52 = arith.constant 0 : index
    %c0_53 = arith.constant 0 : index
    %82 = vector.load %arg13[%c0_52, %c0_53] : memref<1x32xf32, #tpu.memory_space<vmem>>, vector<1x32xf32>
    %83 = arith.addf %81, %82 : vector<1x32xf32>
    %84 = arith.mulf %71, %83 : vector<1x32xf32>
    %85 = arith.addf %80, %84 : vector<1x32xf32>
    %86 = math.tanh %85 : vector<1x32xf32>
    %cst_54 = arith.constant 1.000000e+00 : f32
    %87 = vector.broadcast %cst_54 : f32 to vector<1x32xf32>
    %88 = arith.subf %87, %79 : vector<1x32xf32>
    %89 = arith.mulf %88, %86 : vector<1x32xf32>
    %90 = arith.mulf %79, %35 : vector<1x32xf32>
    %91 = arith.addf %89, %90 : vector<1x32xf32>
    %c0_55 = arith.constant 0 : index
    %c0_56 = arith.constant 0 : index
    %92 = vector.load %arg20[%c0_55, %c0_56] : memref<6x32xf32, #tpu.memory_space<vmem>>, vector<1x32xf32>
    tpu.vector_store %arg20[%c0_55, %c0_56], %91 {strides = array<i32>} : memref<6x32xf32, #tpu.memory_space<vmem>>, vector<1x32xf32>,
    %c0_57 = arith.constant 0 : index
    %c0_58 = arith.constant 0 : index
    %93 = vector.load %arg10[%c0_57, %c0_58] : memref<32x256xf32, #tpu.memory_space<vmem>>, vector<32x256xf32>
    %cst_59 = arith.constant dense<0.000000e+00> : vector<1x256xf32>
    %94 = tpu.matmul %91, %93, %cst_59 {dimension_numbers = #tpu.dot_dimension_numbers<[1], [0], [0], [1], [0, 0, 1, 1], [], []>} : vector<1x32xf32>, vector<32x256xf32>, vector<1x256xf32> -> vector<1x256xf32>
    %95 = vector.extract_strided_slice %29 {offsets = [1, 0], sizes = [1, 128], strides = [1, 1]} : vector<6x128xf32> to vector<1x128xf32>
    %96 = vector.extract_strided_slice %94 {offsets = [0, 128], sizes = [1, 128], strides = [1, 1]} : vector<1x256xf32> to vector<1x128xf32>
    %97 = arith.addf %95, %96 : vector<1x128xf32>
    %cst_60 = arith.constant dense<0xFF800000> : vector<1xf32>
    %98 = vector.multi_reduction <maximumf>, %97, %cst_60 [1] : vector<1x128xf32> to vector<1xf32>
    %99 = vector.shape_cast %98 : vector<1xf32> to vector<1x1xf32>
    %100 = vector.broadcast %99 : vector<1x1xf32> to vector<1x128xf32>
    %101 = arith.subf %97, %100 : vector<1x128xf32>
    %102 = math.exp %101 : vector<1x128xf32>
    %cst_61 = arith.constant dense<0.000000e+00> : vector<1xf32>
    %103 = vector.multi_reduction <add>, %102, %cst_61 [1] : vector<1x128xf32> to vector<1xf32>
    %104 = vector.shape_cast %103 : vector<1xf32> to vector<1x1xf32>
    %105 = tpu.reciprocal %104 {approx = true} : vector<1x1xf32> -> vector<1x1xf32>
    %106 = vector.broadcast %105 : vector<1x1xf32> to vector<1x128xf32>
    %107 = arith.mulf %102, %106 : vector<1x128xf32>
    %c1_62 = arith.constant 1 : index
    %c0_63 = arith.constant 0 : index
    %108 = vector.load %arg17[%c1_62, %c0_63] : memref<6x128xf32, #tpu.memory_space<vmem>>, vector<1x128xf32>
    tpu.vector_store %arg17[%c1_62, %c0_63], %107 {strides = array<i32>} : memref<6x128xf32, #tpu.memory_space<vmem>>, vector<1x128xf32>,
    %c0_64 = arith.constant 0 : index
    %c0_65 = arith.constant 0 : index
    %109 = vector.load %arg3[%c0_64, %c0_65] : memref<128x32xf32, #tpu.memory_space<vmem>>, vector<128x32xf32>
    %cst_66 = arith.constant dense<0.000000e+00> : vector<1x32xf32>
    %110 = tpu.matmul %107, %109, %cst_66 {dimension_numbers = #tpu.dot_dimension_numbers<[1], [0], [0], [1], [0, 0, 1, 1], [], []>} : vector<1x128xf32>, vector<128x32xf32>, vector<1x32xf32> -> vector<1x32xf32>
    %111 = vector.extract_strided_slice %34 {offsets = [1, 0], sizes = [1, 32], strides = [1, 1]} : vector<6x32xf32> to vector<1x32xf32>
    %c0_67 = arith.constant 0 : index
    %c0_68 = arith.constant 0 : index
    %112 = vector.load %arg8[%c0_67, %c0_68] : memref<32x32xf32, #tpu.memory_space<vmem>>, vector<32x32xf32>
    %cst_69 = arith.constant dense<0.000000e+00> : vector<1x32xf32>
    %113 = tpu.matmul %110, %112, %cst_69 {dimension_numbers = #tpu.dot_dimension_numbers<[1], [0], [0], [1], [0, 0, 1, 1], [], []>} : vector<1x32xf32>, vector<32x32xf32>, vector<1x32xf32> -> vector<1x32xf32>
    %114 = arith.addf %111, %113 : vector<1x32xf32>
    %cst_70 = arith.constant 0.000000e+00 : f32
    %115 = vector.broadcast %cst_70 : f32 to vector<1x32xf32>
    %116 = arith.maximumf %114, %115 : vector<1x32xf32>
    %c0_71 = arith.constant 0 : index
    %c0_72 = arith.constant 0 : index
    %117 = vector.load %arg11[%c0_71, %c0_72] : memref<32x128xf32, #tpu.memory_space<vmem>>, vector<32x128xf32>
    %cst_73 = arith.constant dense<0.000000e+00> : vector<1x128xf32>
    %118 = tpu.matmul %116, %117, %cst_73 {dimension_numbers = #tpu.dot_dimension_numbers<[1], [0], [0], [1], [0, 0, 1, 1], [], []>} : vector<1x32xf32>, vector<32x128xf32>, vector<1x128xf32> -> vector<1x128xf32>
    %c0_74 = arith.constant 0 : index
    %c0_75 = arith.constant 0 : index
    %119 = vector.load %arg12[%c0_74, %c0_75] : memref<1x128xf32, #tpu.memory_space<vmem>>, vector<1x128xf32>
    %120 = arith.addf %118, %119 : vector<1x128xf32>
    %121 = vector.extract_strided_slice %120 {offsets = [0, 0], sizes = [1, 32], strides = [1, 1]} : vector<1x128xf32> to vector<1x32xf32>
    %122 = vector.extract_strided_slice %94 {offsets = [0, 0], sizes = [1, 32], strides = [1, 1]} : vector<1x256xf32> to vector<1x32xf32>
    %123 = arith.addf %121, %122 : vector<1x32xf32>
    %124 = arith.negf %123 : vector<1x32xf32>
    %125 = math.exp %124 : vector<1x32xf32>
    %cst_76 = arith.constant 1.000000e+00 : f32
    %126 = vector.broadcast %cst_76 : f32 to vector<1x32xf32>
    %127 = arith.addf %126, %125 : vector<1x32xf32>
    %128 = arith.divf %126, %127 : vector<1x32xf32>
    %129 = vector.extract_strided_slice %120 {offsets = [0, 32], sizes = [1, 32], strides = [1, 1]} : vector<1x128xf32> to vector<1x32xf32>
    %130 = vector.extract_strided_slice %94 {offsets = [0, 32], sizes = [1, 32], strides = [1, 1]} : vector<1x256xf32> to vector<1x32xf32>
    %131 = arith.addf %129, %130 : vector<1x32xf32>
    %132 = arith.negf %131 : vector<1x32xf32>
    %133 = math.exp %132 : vector<1x32xf32>
    %cst_77 = arith.constant 1.000000e+00 : f32
    %134 = vector.broadcast %cst_77 : f32 to vector<1x32xf32>
    %135 = arith.addf %134, %133 : vector<1x32xf32>
    %136 = arith.divf %134, %135 : vector<1x32xf32>
    %137 = vector.extract_strided_slice %120 {offsets = [0, 64], sizes = [1, 32], strides = [1, 1]} : vector<1x128xf32> to vector<1x32xf32>
    %138 = vector.extract_strided_slice %94 {offsets = [0, 64], sizes = [1, 32], strides = [1, 1]} : vector<1x256xf32> to vector<1x32xf32>
    %c0_78 = arith.constant 0 : index
    %c0_79 = arith.constant 0 : index
    %139 = vector.load %arg13[%c0_78, %c0_79] : memref<1x32xf32, #tpu.memory_space<vmem>>, vector<1x32xf32>
    %140 = arith.addf %138, %139 : vector<1x32xf32>
    %141 = arith.mulf %128, %140 : vector<1x32xf32>
    %142 = arith.addf %137, %141 : vector<1x32xf32>
    %143 = math.tanh %142 : vector<1x32xf32>
    %cst_80 = arith.constant 1.000000e+00 : f32
    %144 = vector.broadcast %cst_80 : f32 to vector<1x32xf32>
    %145 = arith.subf %144, %136 : vector<1x32xf32>
    %146 = arith.mulf %145, %143 : vector<1x32xf32>
    %147 = arith.mulf %136, %91 : vector<1x32xf32>
    %148 = arith.addf %146, %147 : vector<1x32xf32>
    %c1_81 = arith.constant 1 : index
    %c0_82 = arith.constant 0 : index
    %149 = vector.load %arg20[%c1_81, %c0_82] : memref<6x32xf32, #tpu.memory_space<vmem>>, vector<1x32xf32>
    tpu.vector_store %arg20[%c1_81, %c0_82], %148 {strides = array<i32>} : memref<6x32xf32, #tpu.memory_space<vmem>>, vector<1x32xf32>,
    %c0_83 = arith.constant 0 : index
    %c0_84 = arith.constant 0 : index
    %150 = vector.load %arg10[%c0_83, %c0_84] : memref<32x256xf32, #tpu.memory_space<vmem>>, vector<32x256xf32>
    %cst_85 = arith.constant dense<0.000000e+00> : vector<1x256xf32>
    %151 = tpu.matmul %148, %150, %cst_85 {dimension_numbers = #tpu.dot_dimension_numbers<[1], [0], [0], [1], [0, 0, 1, 1], [], []>} : vector<1x32xf32>, vector<32x256xf32>, vector<1x256xf32> -> vector<1x256xf32>
    %152 = vector.extract_strided_slice %29 {offsets = [2, 0], sizes = [1, 128], strides = [1, 1]} : vector<6x128xf32> to vector<1x128xf32>
    %153 = vector.extract_strided_slice %151 {offsets = [0, 128], sizes = [1, 128], strides = [1, 1]} : vector<1x256xf32> to vector<1x128xf32>
    %154 = arith.addf %152, %153 : vector<1x128xf32>
    %cst_86 = arith.constant dense<0xFF800000> : vector<1xf32>
    %155 = vector.multi_reduction <maximumf>, %154, %cst_86 [1] : vector<1x128xf32> to vector<1xf32>
    %156 = vector.shape_cast %155 : vector<1xf32> to vector<1x1xf32>
    %157 = vector.broadcast %156 : vector<1x1xf32> to vector<1x128xf32>
    %158 = arith.subf %154, %157 : vector<1x128xf32>
    %159 = math.exp %158 : vector<1x128xf32>
    %cst_87 = arith.constant dense<0.000000e+00> : vector<1xf32>
    %160 = vector.multi_reduction <add>, %159, %cst_87 [1] : vector<1x128xf32> to vector<1xf32>
    %161 = vector.shape_cast %160 : vector<1xf32> to vector<1x1xf32>
    %162 = tpu.reciprocal %161 {approx = true} : vector<1x1xf32> -> vector<1x1xf32>
    %163 = vector.broadcast %162 : vector<1x1xf32> to vector<1x128xf32>
    %164 = arith.mulf %159, %163 : vector<1x128xf32>
    %c2_88 = arith.constant 2 : index
    %c0_89 = arith.constant 0 : index
    %165 = vector.load %arg17[%c2_88, %c0_89] : memref<6x128xf32, #tpu.memory_space<vmem>>, vector<1x128xf32>
    tpu.vector_store %arg17[%c2_88, %c0_89], %164 {strides = array<i32>} : memref<6x128xf32, #tpu.memory_space<vmem>>, vector<1x128xf32>,
    %c0_90 = arith.constant 0 : index
    %c0_91 = arith.constant 0 : index
    %166 = vector.load %arg3[%c0_90, %c0_91] : memref<128x32xf32, #tpu.memory_space<vmem>>, vector<128x32xf32>
    %cst_92 = arith.constant dense<0.000000e+00> : vector<1x32xf32>
    %167 = tpu.matmul %164, %166, %cst_92 {dimension_numbers = #tpu.dot_dimension_numbers<[1], [0], [0], [1], [0, 0, 1, 1], [], []>} : vector<1x128xf32>, vector<128x32xf32>, vector<1x32xf32> -> vector<1x32xf32>
    %168 = vector.extract_strided_slice %34 {offsets = [2, 0], sizes = [1, 32], strides = [1, 1]} : vector<6x32xf32> to vector<1x32xf32>
    %c0_93 = arith.constant 0 : index
    %c0_94 = arith.constant 0 : index
    %169 = vector.load %arg8[%c0_93, %c0_94] : memref<32x32xf32, #tpu.memory_space<vmem>>, vector<32x32xf32>
    %cst_95 = arith.constant dense<0.000000e+00> : vector<1x32xf32>
    %170 = tpu.matmul %167, %169, %cst_95 {dimension_numbers = #tpu.dot_dimension_numbers<[1], [0], [0], [1], [0, 0, 1, 1], [], []>} : vector<1x32xf32>, vector<32x32xf32>, vector<1x32xf32> -> vector<1x32xf32>
    %171 = arith.addf %168, %170 : vector<1x32xf32>
    %cst_96 = arith.constant 0.000000e+00 : f32
    %172 = vector.broadcast %cst_96 : f32 to vector<1x32xf32>
    %173 = arith.maximumf %171, %172 : vector<1x32xf32>
    %c0_97 = arith.constant 0 : index
    %c0_98 = arith.constant 0 : index
    %174 = vector.load %arg11[%c0_97, %c0_98] : memref<32x128xf32, #tpu.memory_space<vmem>>, vector<32x128xf32>
    %cst_99 = arith.constant dense<0.000000e+00> : vector<1x128xf32>
    %175 = tpu.matmul %173, %174, %cst_99 {dimension_numbers = #tpu.dot_dimension_numbers<[1], [0], [0], [1], [0, 0, 1, 1], [], []>} : vector<1x32xf32>, vector<32x128xf32>, vector<1x128xf32> -> vector<1x128xf32>
    %c0_100 = arith.constant 0 : index
    %c0_101 = arith.constant 0 : index
    %176 = vector.load %arg12[%c0_100, %c0_101] : memref<1x128xf32, #tpu.memory_space<vmem>>, vector<1x128xf32>
    %177 = arith.addf %175, %176 : vector<1x128xf32>
    %178 = vector.extract_strided_slice %177 {offsets = [0, 0], sizes = [1, 32], strides = [1, 1]} : vector<1x128xf32> to vector<1x32xf32>
    %179 = vector.extract_strided_slice %151 {offsets = [0, 0], sizes = [1, 32], strides = [1, 1]} : vector<1x256xf32> to vector<1x32xf32>
    %180 = arith.addf %178, %179 : vector<1x32xf32>
    %181 = arith.negf %180 : vector<1x32xf32>
    %182 = math.exp %181 : vector<1x32xf32>
    %cst_102 = arith.constant 1.000000e+00 : f32
    %183 = vector.broadcast %cst_102 : f32 to vector<1x32xf32>
    %184 = arith.addf %183, %182 : vector<1x32xf32>
    %185 = arith.divf %183, %184 : vector<1x32xf32>
    %186 = vector.extract_strided_slice %177 {offsets = [0, 32], sizes = [1, 32], strides = [1, 1]} : vector<1x128xf32> to vector<1x32xf32>
    %187 = vector.extract_strided_slice %151 {offsets = [0, 32], sizes = [1, 32], strides = [1, 1]} : vector<1x256xf32> to vector<1x32xf32>
    %188 = arith.addf %186, %187 : vector<1x32xf32>
    %189 = arith.negf %188 : vector<1x32xf32>
    %190 = math.exp %189 : vector<1x32xf32>
    %cst_103 = arith.constant 1.000000e+00 : f32
    %191 = vector.broadcast %cst_103 : f32 to vector<1x32xf32>
    %192 = arith.addf %191, %190 : vector<1x32xf32>
    %193 = arith.divf %191, %192 : vector<1x32xf32>
    %194 = vector.extract_strided_slice %177 {offsets = [0, 64], sizes = [1, 32], strides = [1, 1]} : vector<1x128xf32> to vector<1x32xf32>
    %195 = vector.extract_strided_slice %151 {offsets = [0, 64], sizes = [1, 32], strides = [1, 1]} : vector<1x256xf32> to vector<1x32xf32>
    %c0_104 = arith.constant 0 : index
    %c0_105 = arith.constant 0 : index
    %196 = vector.load %arg13[%c0_104, %c0_105] : memref<1x32xf32, #tpu.memory_space<vmem>>, vector<1x32xf32>
    %197 = arith.addf %195, %196 : vector<1x32xf32>
    %198 = arith.mulf %185, %197 : vector<1x32xf32>
    %199 = arith.addf %194, %198 : vector<1x32xf32>
    %200 = math.tanh %199 : vector<1x32xf32>
    %cst_106 = arith.constant 1.000000e+00 : f32
    %201 = vector.broadcast %cst_106 : f32 to vector<1x32xf32>
    %202 = arith.subf %201, %193 : vector<1x32xf32>
    %203 = arith.mulf %202, %200 : vector<1x32xf32>
    %204 = arith.mulf %193, %148 : vector<1x32xf32>
    %205 = arith.addf %203, %204 : vector<1x32xf32>
    %c2_107 = arith.constant 2 : index
    %c0_108 = arith.constant 0 : index
    %206 = vector.load %arg20[%c2_107, %c0_108] : memref<6x32xf32, #tpu.memory_space<vmem>>, vector<1x32xf32>
    tpu.vector_store %arg20[%c2_107, %c0_108], %205 {strides = array<i32>} : memref<6x32xf32, #tpu.memory_space<vmem>>, vector<1x32xf32>,
    %c0_109 = arith.constant 0 : index
    %c0_110 = arith.constant 0 : index
    %207 = vector.load %arg10[%c0_109, %c0_110] : memref<32x256xf32, #tpu.memory_space<vmem>>, vector<32x256xf32>
    %cst_111 = arith.constant dense<0.000000e+00> : vector<1x256xf32>
    %208 = tpu.matmul %205, %207, %cst_111 {dimension_numbers = #tpu.dot_dimension_numbers<[1], [0], [0], [1], [0, 0, 1, 1], [], []>} : vector<1x32xf32>, vector<32x256xf32>, vector<1x256xf32> -> vector<1x256xf32>
    %209 = vector.extract_strided_slice %29 {offsets = [3, 0], sizes = [1, 128], strides = [1, 1]} : vector<6x128xf32> to vector<1x128xf32>
    %210 = vector.extract_strided_slice %208 {offsets = [0, 128], sizes = [1, 128], strides = [1, 1]} : vector<1x256xf32> to vector<1x128xf32>
    %211 = arith.addf %209, %210 : vector<1x128xf32>
    %cst_112 = arith.constant dense<0xFF800000> : vector<1xf32>
    %212 = vector.multi_reduction <maximumf>, %211, %cst_112 [1] : vector<1x128xf32> to vector<1xf32>
    %213 = vector.shape_cast %212 : vector<1xf32> to vector<1x1xf32>
    %214 = vector.broadcast %213 : vector<1x1xf32> to vector<1x128xf32>
    %215 = arith.subf %211, %214 : vector<1x128xf32>
    %216 = math.exp %215 : vector<1x128xf32>
    %cst_113 = arith.constant dense<0.000000e+00> : vector<1xf32>
    %217 = vector.multi_reduction <add>, %216, %cst_113 [1] : vector<1x128xf32> to vector<1xf32>
    %218 = vector.shape_cast %217 : vector<1xf32> to vector<1x1xf32>
    %219 = tpu.reciprocal %218 {approx = true} : vector<1x1xf32> -> vector<1x1xf32>
    %220 = vector.broadcast %219 : vector<1x1xf32> to vector<1x128xf32>
    %221 = arith.mulf %216, %220 : vector<1x128xf32>
    %c3_114 = arith.constant 3 : index
    %c0_115 = arith.constant 0 : index
    %222 = vector.load %arg17[%c3_114, %c0_115] : memref<6x128xf32, #tpu.memory_space<vmem>>, vector<1x128xf32>
    tpu.vector_store %arg17[%c3_114, %c0_115], %221 {strides = array<i32>} : memref<6x128xf32, #tpu.memory_space<vmem>>, vector<1x128xf32>,
    %c0_116 = arith.constant 0 : index
    %c0_117 = arith.constant 0 : index
    %223 = vector.load %arg3[%c0_116, %c0_117] : memref<128x32xf32, #tpu.memory_space<vmem>>, vector<128x32xf32>
    %cst_118 = arith.constant dense<0.000000e+00> : vector<1x32xf32>
    %224 = tpu.matmul %221, %223, %cst_118 {dimension_numbers = #tpu.dot_dimension_numbers<[1], [0], [0], [1], [0, 0, 1, 1], [], []>} : vector<1x128xf32>, vector<128x32xf32>, vector<1x32xf32> -> vector<1x32xf32>
    %225 = vector.extract_strided_slice %34 {offsets = [3, 0], sizes = [1, 32], strides = [1, 1]} : vector<6x32xf32> to vector<1x32xf32>
    %c0_119 = arith.constant 0 : index
    %c0_120 = arith.constant 0 : index
    %226 = vector.load %arg8[%c0_119, %c0_120] : memref<32x32xf32, #tpu.memory_space<vmem>>, vector<32x32xf32>
    %cst_121 = arith.constant dense<0.000000e+00> : vector<1x32xf32>
    %227 = tpu.matmul %224, %226, %cst_121 {dimension_numbers = #tpu.dot_dimension_numbers<[1], [0], [0], [1], [0, 0, 1, 1], [], []>} : vector<1x32xf32>, vector<32x32xf32>, vector<1x32xf32> -> vector<1x32xf32>
    %228 = arith.addf %225, %227 : vector<1x32xf32>
    %cst_122 = arith.constant 0.000000e+00 : f32
    %229 = vector.broadcast %cst_122 : f32 to vector<1x32xf32>
    %230 = arith.maximumf %228, %229 : vector<1x32xf32>
    %c0_123 = arith.constant 0 : index
    %c0_124 = arith.constant 0 : index
    %231 = vector.load %arg11[%c0_123, %c0_124] : memref<32x128xf32, #tpu.memory_space<vmem>>, vector<32x128xf32>
    %cst_125 = arith.constant dense<0.000000e+00> : vector<1x128xf32>
    %232 = tpu.matmul %230, %231, %cst_125 {dimension_numbers = #tpu.dot_dimension_numbers<[1], [0], [0], [1], [0, 0, 1, 1], [], []>} : vector<1x32xf32>, vector<32x128xf32>, vector<1x128xf32> -> vector<1x128xf32>
    %c0_126 = arith.constant 0 : index
    %c0_127 = arith.constant 0 : index
    %233 = vector.load %arg12[%c0_126, %c0_127] : memref<1x128xf32, #tpu.memory_space<vmem>>, vector<1x128xf32>
    %234 = arith.addf %232, %233 : vector<1x128xf32>
    %235 = vector.extract_strided_slice %234 {offsets = [0, 0], sizes = [1, 32], strides = [1, 1]} : vector<1x128xf32> to vector<1x32xf32>
    %236 = vector.extract_strided_slice %208 {offsets = [0, 0], sizes = [1, 32], strides = [1, 1]} : vector<1x256xf32> to vector<1x32xf32>
    %237 = arith.addf %235, %236 : vector<1x32xf32>
    %238 = arith.negf %237 : vector<1x32xf32>
    %239 = math.exp %238 : vector<1x32xf32>
    %cst_128 = arith.constant 1.000000e+00 : f32
    %240 = vector.broadcast %cst_128 : f32 to vector<1x32xf32>
    %241 = arith.addf %240, %239 : vector<1x32xf32>
    %242 = arith.divf %240, %241 : vector<1x32xf32>
    %243 = vector.extract_strided_slice %234 {offsets = [0, 32], sizes = [1, 32], strides = [1, 1]} : vector<1x128xf32> to vector<1x32xf32>
    %244 = vector.extract_strided_slice %208 {offsets = [0, 32], sizes = [1, 32], strides = [1, 1]} : vector<1x256xf32> to vector<1x32xf32>
    %245 = arith.addf %243, %244 : vector<1x32xf32>
    %246 = arith.negf %245 : vector<1x32xf32>
    %247 = math.exp %246 : vector<1x32xf32>
    %cst_129 = arith.constant 1.000000e+00 : f32
    %248 = vector.broadcast %cst_129 : f32 to vector<1x32xf32>
    %249 = arith.addf %248, %247 : vector<1x32xf32>
    %250 = arith.divf %248, %249 : vector<1x32xf32>
    %251 = vector.extract_strided_slice %234 {offsets = [0, 64], sizes = [1, 32], strides = [1, 1]} : vector<1x128xf32> to vector<1x32xf32>
    %252 = vector.extract_strided_slice %208 {offsets = [0, 64], sizes = [1, 32], strides = [1, 1]} : vector<1x256xf32> to vector<1x32xf32>
    %c0_130 = arith.constant 0 : index
    %c0_131 = arith.constant 0 : index
    %253 = vector.load %arg13[%c0_130, %c0_131] : memref<1x32xf32, #tpu.memory_space<vmem>>, vector<1x32xf32>
    %254 = arith.addf %252, %253 : vector<1x32xf32>
    %255 = arith.mulf %242, %254 : vector<1x32xf32>
    %256 = arith.addf %251, %255 : vector<1x32xf32>
    %257 = math.tanh %256 : vector<1x32xf32>
    %cst_132 = arith.constant 1.000000e+00 : f32
    %258 = vector.broadcast %cst_132 : f32 to vector<1x32xf32>
    %259 = arith.subf %258, %250 : vector<1x32xf32>
    %260 = arith.mulf %259, %257 : vector<1x32xf32>
    %261 = arith.mulf %250, %205 : vector<1x32xf32>
    %262 = arith.addf %260, %261 : vector<1x32xf32>
    %c3_133 = arith.constant 3 : index
    %c0_134 = arith.constant 0 : index
    %263 = vector.load %arg20[%c3_133, %c0_134] : memref<6x32xf32, #tpu.memory_space<vmem>>, vector<1x32xf32>
    tpu.vector_store %arg20[%c3_133, %c0_134], %262 {strides = array<i32>} : memref<6x32xf32, #tpu.memory_space<vmem>>, vector<1x32xf32>,
    %c0_135 = arith.constant 0 : index
    %c0_136 = arith.constant 0 : index
    %264 = vector.load %arg10[%c0_135, %c0_136] : memref<32x256xf32, #tpu.memory_space<vmem>>, vector<32x256xf32>
    %cst_137 = arith.constant dense<0.000000e+00> : vector<1x256xf32>
    %265 = tpu.matmul %262, %264, %cst_137 {dimension_numbers = #tpu.dot_dimension_numbers<[1], [0], [0], [1], [0, 0, 1, 1], [], []>} : vector<1x32xf32>, vector<32x256xf32>, vector<1x256xf32> -> vector<1x256xf32>
    %266 = vector.extract_strided_slice %29 {offsets = [4, 0], sizes = [1, 128], strides = [1, 1]} : vector<6x128xf32> to vector<1x128xf32>
    %267 = vector.extract_strided_slice %265 {offsets = [0, 128], sizes = [1, 128], strides = [1, 1]} : vector<1x256xf32> to vector<1x128xf32>
    %268 = arith.addf %266, %267 : vector<1x128xf32>
    %cst_138 = arith.constant dense<0xFF800000> : vector<1xf32>
    %269 = vector.multi_reduction <maximumf>, %268, %cst_138 [1] : vector<1x128xf32> to vector<1xf32>
    %270 = vector.shape_cast %269 : vector<1xf32> to vector<1x1xf32>
    %271 = vector.broadcast %270 : vector<1x1xf32> to vector<1x128xf32>
    %272 = arith.subf %268, %271 : vector<1x128xf32>
    %273 = math.exp %272 : vector<1x128xf32>
    %cst_139 = arith.constant dense<0.000000e+00> : vector<1xf32>
    %274 = vector.multi_reduction <add>, %273, %cst_139 [1] : vector<1x128xf32> to vector<1xf32>
    %275 = vector.shape_cast %274 : vector<1xf32> to vector<1x1xf32>
    %276 = tpu.reciprocal %275 {approx = true} : vector<1x1xf32> -> vector<1x1xf32>
    %277 = vector.broadcast %276 : vector<1x1xf32> to vector<1x128xf32>
    %278 = arith.mulf %273, %277 : vector<1x128xf32>
    %c4_140 = arith.constant 4 : index
    %c0_141 = arith.constant 0 : index
    %279 = vector.load %arg17[%c4_140, %c0_141] : memref<6x128xf32, #tpu.memory_space<vmem>>, vector<1x128xf32>
    tpu.vector_store %arg17[%c4_140, %c0_141], %278 {strides = array<i32>} : memref<6x128xf32, #tpu.memory_space<vmem>>, vector<1x128xf32>,
    %c0_142 = arith.constant 0 : index
    %c0_143 = arith.constant 0 : index
    %280 = vector.load %arg3[%c0_142, %c0_143] : memref<128x32xf32, #tpu.memory_space<vmem>>, vector<128x32xf32>
    %cst_144 = arith.constant dense<0.000000e+00> : vector<1x32xf32>
    %281 = tpu.matmul %278, %280, %cst_144 {dimension_numbers = #tpu.dot_dimension_numbers<[1], [0], [0], [1], [0, 0, 1, 1], [], []>} : vector<1x128xf32>, vector<128x32xf32>, vector<1x32xf32> -> vector<1x32xf32>
    %282 = vector.extract_strided_slice %34 {offsets = [4, 0], sizes = [1, 32], strides = [1, 1]} : vector<6x32xf32> to vector<1x32xf32>
    %c0_145 = arith.constant 0 : index
    %c0_146 = arith.constant 0 : index
    %283 = vector.load %arg8[%c0_145, %c0_146] : memref<32x32xf32, #tpu.memory_space<vmem>>, vector<32x32xf32>
    %cst_147 = arith.constant dense<0.000000e+00> : vector<1x32xf32>
    %284 = tpu.matmul %281, %283, %cst_147 {dimension_numbers = #tpu.dot_dimension_numbers<[1], [0], [0], [1], [0, 0, 1, 1], [], []>} : vector<1x32xf32>, vector<32x32xf32>, vector<1x32xf32> -> vector<1x32xf32>
    %285 = arith.addf %282, %284 : vector<1x32xf32>
    %cst_148 = arith.constant 0.000000e+00 : f32
    %286 = vector.broadcast %cst_148 : f32 to vector<1x32xf32>
    %287 = arith.maximumf %285, %286 : vector<1x32xf32>
    %c0_149 = arith.constant 0 : index
    %c0_150 = arith.constant 0 : index
    %288 = vector.load %arg11[%c0_149, %c0_150] : memref<32x128xf32, #tpu.memory_space<vmem>>, vector<32x128xf32>
    %cst_151 = arith.constant dense<0.000000e+00> : vector<1x128xf32>
    %289 = tpu.matmul %287, %288, %cst_151 {dimension_numbers = #tpu.dot_dimension_numbers<[1], [0], [0], [1], [0, 0, 1, 1], [], []>} : vector<1x32xf32>, vector<32x128xf32>, vector<1x128xf32> -> vector<1x128xf32>
    %c0_152 = arith.constant 0 : index
    %c0_153 = arith.constant 0 : index
    %290 = vector.load %arg12[%c0_152, %c0_153] : memref<1x128xf32, #tpu.memory_space<vmem>>, vector<1x128xf32>
    %291 = arith.addf %289, %290 : vector<1x128xf32>
    %292 = vector.extract_strided_slice %291 {offsets = [0, 0], sizes = [1, 32], strides = [1, 1]} : vector<1x128xf32> to vector<1x32xf32>
    %293 = vector.extract_strided_slice %265 {offsets = [0, 0], sizes = [1, 32], strides = [1, 1]} : vector<1x256xf32> to vector<1x32xf32>
    %294 = arith.addf %292, %293 : vector<1x32xf32>
    %295 = arith.negf %294 : vector<1x32xf32>
    %296 = math.exp %295 : vector<1x32xf32>
    %cst_154 = arith.constant 1.000000e+00 : f32
    %297 = vector.broadcast %cst_154 : f32 to vector<1x32xf32>
    %298 = arith.addf %297, %296 : vector<1x32xf32>
    %299 = arith.divf %297, %298 : vector<1x32xf32>
    %300 = vector.extract_strided_slice %291 {offsets = [0, 32], sizes = [1, 32], strides = [1, 1]} : vector<1x128xf32> to vector<1x32xf32>
    %301 = vector.extract_strided_slice %265 {offsets = [0, 32], sizes = [1, 32], strides = [1, 1]} : vector<1x256xf32> to vector<1x32xf32>
    %302 = arith.addf %300, %301 : vector<1x32xf32>
    %303 = arith.negf %302 : vector<1x32xf32>
    %304 = math.exp %303 : vector<1x32xf32>
    %cst_155 = arith.constant 1.000000e+00 : f32
    %305 = vector.broadcast %cst_155 : f32 to vector<1x32xf32>
    %306 = arith.addf %305, %304 : vector<1x32xf32>
    %307 = arith.divf %305, %306 : vector<1x32xf32>
    %308 = vector.extract_strided_slice %291 {offsets = [0, 64], sizes = [1, 32], strides = [1, 1]} : vector<1x128xf32> to vector<1x32xf32>
    %309 = vector.extract_strided_slice %265 {offsets = [0, 64], sizes = [1, 32], strides = [1, 1]} : vector<1x256xf32> to vector<1x32xf32>
    %c0_156 = arith.constant 0 : index
    %c0_157 = arith.constant 0 : index
    %310 = vector.load %arg13[%c0_156, %c0_157] : memref<1x32xf32, #tpu.memory_space<vmem>>, vector<1x32xf32>
    %311 = arith.addf %309, %310 : vector<1x32xf32>
    %312 = arith.mulf %299, %311 : vector<1x32xf32>
    %313 = arith.addf %308, %312 : vector<1x32xf32>
    %314 = math.tanh %313 : vector<1x32xf32>
    %cst_158 = arith.constant 1.000000e+00 : f32
    %315 = vector.broadcast %cst_158 : f32 to vector<1x32xf32>
    %316 = arith.subf %315, %307 : vector<1x32xf32>
    %317 = arith.mulf %316, %314 : vector<1x32xf32>
    %318 = arith.mulf %307, %262 : vector<1x32xf32>
    %319 = arith.addf %317, %318 : vector<1x32xf32>
    %c4_159 = arith.constant 4 : index
    %c0_160 = arith.constant 0 : index
    %320 = vector.load %arg20[%c4_159, %c0_160] : memref<6x32xf32, #tpu.memory_space<vmem>>, vector<1x32xf32>
    tpu.vector_store %arg20[%c4_159, %c0_160], %319 {strides = array<i32>} : memref<6x32xf32, #tpu.memory_space<vmem>>, vector<1x32xf32>,
    %c0_161 = arith.constant 0 : index
    %c0_162 = arith.constant 0 : index
    %321 = vector.load %arg10[%c0_161, %c0_162] : memref<32x256xf32, #tpu.memory_space<vmem>>, vector<32x256xf32>
    %cst_163 = arith.constant dense<0.000000e+00> : vector<1x256xf32>
    %322 = tpu.matmul %319, %321, %cst_163 {dimension_numbers = #tpu.dot_dimension_numbers<[1], [0], [0], [1], [0, 0, 1, 1], [], []>} : vector<1x32xf32>, vector<32x256xf32>, vector<1x256xf32> -> vector<1x256xf32>
    %323 = vector.extract_strided_slice %29 {offsets = [5, 0], sizes = [1, 128], strides = [1, 1]} : vector<6x128xf32> to vector<1x128xf32>
    %324 = vector.extract_strided_slice %322 {offsets = [0, 128], sizes = [1, 128], strides = [1, 1]} : vector<1x256xf32> to vector<1x128xf32>
    %325 = arith.addf %323, %324 : vector<1x128xf32>
    %cst_164 = arith.constant dense<0xFF800000> : vector<1xf32>
    %326 = vector.multi_reduction <maximumf>, %325, %cst_164 [1] : vector<1x128xf32> to vector<1xf32>
    %327 = vector.shape_cast %326 : vector<1xf32> to vector<1x1xf32>
    %328 = vector.broadcast %327 : vector<1x1xf32> to vector<1x128xf32>
    %329 = arith.subf %325, %328 : vector<1x128xf32>
    %330 = math.exp %329 : vector<1x128xf32>
    %cst_165 = arith.constant dense<0.000000e+00> : vector<1xf32>
    %331 = vector.multi_reduction <add>, %330, %cst_165 [1] : vector<1x128xf32> to vector<1xf32>
    %332 = vector.shape_cast %331 : vector<1xf32> to vector<1x1xf32>
    %333 = tpu.reciprocal %332 {approx = true} : vector<1x1xf32> -> vector<1x1xf32>
    %334 = vector.broadcast %333 : vector<1x1xf32> to vector<1x128xf32>
    %335 = arith.mulf %330, %334 : vector<1x128xf32>
    %c5_166 = arith.constant 5 : index
    %c0_167 = arith.constant 0 : index
    %336 = vector.load %arg17[%c5_166, %c0_167] : memref<6x128xf32, #tpu.memory_space<vmem>>, vector<1x128xf32>
    tpu.vector_store %arg17[%c5_166, %c0_167], %335 {strides = array<i32>} : memref<6x128xf32, #tpu.memory_space<vmem>>, vector<1x128xf32>,
    %c0_168 = arith.constant 0 : index
    %c0_169 = arith.constant 0 : index
    %337 = vector.load %arg3[%c0_168, %c0_169] : memref<128x32xf32, #tpu.memory_space<vmem>>, vector<128x32xf32>
    %cst_170 = arith.constant dense<0.000000e+00> : vector<1x32xf32>
    %338 = tpu.matmul %335, %337, %cst_170 {dimension_numbers = #tpu.dot_dimension_numbers<[1], [0], [0], [1], [0, 0, 1, 1], [], []>} : vector<1x128xf32>, vector<128x32xf32>, vector<1x32xf32> -> vector<1x32xf32>
    %339 = vector.extract_strided_slice %34 {offsets = [5, 0], sizes = [1, 32], strides = [1, 1]} : vector<6x32xf32> to vector<1x32xf32>
    %c0_171 = arith.constant 0 : index
    %c0_172 = arith.constant 0 : index
    %340 = vector.load %arg8[%c0_171, %c0_172] : memref<32x32xf32, #tpu.memory_space<vmem>>, vector<32x32xf32>
    %cst_173 = arith.constant dense<0.000000e+00> : vector<1x32xf32>
    %341 = tpu.matmul %338, %340, %cst_173 {dimension_numbers = #tpu.dot_dimension_numbers<[1], [0], [0], [1], [0, 0, 1, 1], [], []>} : vector<1x32xf32>, vector<32x32xf32>, vector<1x32xf32> -> vector<1x32xf32>
    %342 = arith.addf %339, %341 : vector<1x32xf32>
    %cst_174 = arith.constant 0.000000e+00 : f32
    %343 = vector.broadcast %cst_174 : f32 to vector<1x32xf32>
    %344 = arith.maximumf %342, %343 : vector<1x32xf32>
    %c0_175 = arith.constant 0 : index
    %c0_176 = arith.constant 0 : index
    %345 = vector.load %arg11[%c0_175, %c0_176] : memref<32x128xf32, #tpu.memory_space<vmem>>, vector<32x128xf32>
    %cst_177 = arith.constant dense<0.000000e+00> : vector<1x128xf32>
    %346 = tpu.matmul %344, %345, %cst_177 {dimension_numbers = #tpu.dot_dimension_numbers<[1], [0], [0], [1], [0, 0, 1, 1], [], []>} : vector<1x32xf32>, vector<32x128xf32>, vector<1x128xf32> -> vector<1x128xf32>
    %c0_178 = arith.constant 0 : index
    %c0_179 = arith.constant 0 : index
    %347 = vector.load %arg12[%c0_178, %c0_179] : memref<1x128xf32, #tpu.memory_space<vmem>>, vector<1x128xf32>
    %348 = arith.addf %346, %347 : vector<1x128xf32>
    %349 = vector.extract_strided_slice %348 {offsets = [0, 0], sizes = [1, 32], strides = [1, 1]} : vector<1x128xf32> to vector<1x32xf32>
    %350 = vector.extract_strided_slice %322 {offsets = [0, 0], sizes = [1, 32], strides = [1, 1]} : vector<1x256xf32> to vector<1x32xf32>
    %351 = arith.addf %349, %350 : vector<1x32xf32>
    %352 = arith.negf %351 : vector<1x32xf32>
    %353 = math.exp %352 : vector<1x32xf32>
    %cst_180 = arith.constant 1.000000e+00 : f32
    %354 = vector.broadcast %cst_180 : f32 to vector<1x32xf32>
    %355 = arith.addf %354, %353 : vector<1x32xf32>
    %356 = arith.divf %354, %355 : vector<1x32xf32>
    %357 = vector.extract_strided_slice %348 {offsets = [0, 32], sizes = [1, 32], strides = [1, 1]} : vector<1x128xf32> to vector<1x32xf32>
    %358 = vector.extract_strided_slice %322 {offsets = [0, 32], sizes = [1, 32], strides = [1, 1]} : vector<1x256xf32> to vector<1x32xf32>
    %359 = arith.addf %357, %358 : vector<1x32xf32>
    %360 = arith.negf %359 : vector<1x32xf32>
    %361 = math.exp %360 : vector<1x32xf32>
    %cst_181 = arith.constant 1.000000e+00 : f32
    %362 = vector.broadcast %cst_181 : f32 to vector<1x32xf32>
    %363 = arith.addf %362, %361 : vector<1x32xf32>
    %364 = arith.divf %362, %363 : vector<1x32xf32>
    %365 = vector.extract_strided_slice %348 {offsets = [0, 64], sizes = [1, 32], strides = [1, 1]} : vector<1x128xf32> to vector<1x32xf32>
    %366 = vector.extract_strided_slice %322 {offsets = [0, 64], sizes = [1, 32], strides = [1, 1]} : vector<1x256xf32> to vector<1x32xf32>
    %c0_182 = arith.constant 0 : index
    %c0_183 = arith.constant 0 : index
    %367 = vector.load %arg13[%c0_182, %c0_183] : memref<1x32xf32, #tpu.memory_space<vmem>>, vector<1x32xf32>
    %368 = arith.addf %366, %367 : vector<1x32xf32>
    %369 = arith.mulf %356, %368 : vector<1x32xf32>
    %370 = arith.addf %365, %369 : vector<1x32xf32>
    %371 = math.tanh %370 : vector<1x32xf32>
    %cst_184 = arith.constant 1.000000e+00 : f32
    %372 = vector.broadcast %cst_184 : f32 to vector<1x32xf32>
    %373 = arith.subf %372, %364 : vector<1x32xf32>
    %374 = arith.mulf %373, %371 : vector<1x32xf32>
    %375 = arith.mulf %364, %319 : vector<1x32xf32>
    %376 = arith.addf %374, %375 : vector<1x32xf32>
    %c5_185 = arith.constant 5 : index
    %c0_186 = arith.constant 0 : index
    %377 = vector.load %arg20[%c5_185, %c0_186] : memref<6x32xf32, #tpu.memory_space<vmem>>, vector<1x32xf32>
    tpu.vector_store %arg20[%c5_185, %c0_186], %376 {strides = array<i32>} : memref<6x32xf32, #tpu.memory_space<vmem>>, vector<1x32xf32>,
    %c0_187 = arith.constant 0 : index
    %c0_188 = arith.constant 0 : index
    %378 = vector.load %arg18[%c0_187, %c0_188] : memref<1x32xf32, #tpu.memory_space<vmem>>, vector<1x32xf32>
    tpu.vector_store %arg18[%c0_187, %c0_188], %376 {strides = array<i32>} : memref<1x32xf32, #tpu.memory_space<vmem>>, vector<1x32xf32>,
    %c0_189 = arith.constant 0 : index
    %c0_190 = arith.constant 0 : index
    %379 = vector.load %arg20[%c0_189, %c0_190] : memref<6x32xf32, #tpu.memory_space<vmem>>, vector<6x32xf32>
    %c0_191 = arith.constant 0 : index
    %c0_192 = arith.constant 0 : index
    %380 = vector.load %arg14[%c0_191, %c0_192] : memref<32x128xf32, #tpu.memory_space<vmem>>, vector<32x128xf32>
    %cst_193 = arith.constant dense<0.000000e+00> : vector<6x128xf32>
    %381 = tpu.matmul %379, %380, %cst_193 {dimension_numbers = #tpu.dot_dimension_numbers<[1], [0], [0], [1], [0, 0, 1, 1], [], []>} : vector<6x32xf32>, vector<32x128xf32>, vector<6x128xf32> -> vector<6x128xf32>
    %c0_194 = arith.constant 0 : index
    %c0_195 = arith.constant 0 : index
    %382 = vector.load %arg15[%c0_194, %c0_195] : memref<1x128xf32, #tpu.memory_space<vmem>>, vector<1x128xf32>
    %383 = vector.broadcast %382 : vector<1x128xf32> to vector<6x128xf32>
    %384 = arith.addf %381, %383 : vector<6x128xf32>
    %cst_196 = arith.constant dense<0xFF800000> : vector<6xf32>
    %385 = vector.multi_reduction <maximumf>, %384, %cst_196 [1] : vector<6x128xf32> to vector<6xf32>
    %386 = vector.shape_cast %385 : vector<6xf32> to vector<6x1xf32>
    %387 = vector.broadcast %386 : vector<6x1xf32> to vector<6x128xf32>
    %388 = arith.subf %384, %387 : vector<6x128xf32>
    %389 = math.exp %388 : vector<6x128xf32>
    %cst_197 = arith.constant dense<0.000000e+00> : vector<6xf32>
    %390 = vector.multi_reduction <add>, %389, %cst_197 [1] : vector<6x128xf32> to vector<6xf32>
    %391 = vector.shape_cast %390 : vector<6xf32> to vector<6x1xf32>
    %392 = math.log %391 : vector<6x1xf32>
    %393 = vector.broadcast %392 : vector<6x1xf32> to vector<6x128xf32>
    %394 = arith.subf %388, %393 : vector<6x128xf32>
    %c0_198 = arith.constant 0 : index
    %c0_199 = arith.constant 0 : index
    %395 = vector.load %arg16[%c0_198, %c0_199] : memref<6x128xf32, #tpu.memory_space<vmem>>, vector<6x128xf32>
    tpu.vector_store %arg16[%c0_198, %c0_199], %394 {strides = array<i32>} : memref<6x128xf32, #tpu.memory_space<vmem>>, vector<6x128xf32>,
    return
  }
  func.func @transform_0(%arg0: i32, %arg1: memref<6xi32, #tpu.memory_space<smem>>) -> (i32, i32) {
    %c0_i32 = arith.constant 0 : i32
    %c0_i32_0 = arith.constant 0 : i32
    %c0_i32_1 = arith.constant 0 : i32
    return %c0_i32, %c0_i32_0 : i32, i32
  }
  func.func @transform_1(%arg0: i32, %arg1: memref<6xi32, #tpu.memory_space<smem>>) -> (i32, i32) {
    %c0_i32 = arith.constant 0 : i32
    %c0_i32_0 = arith.constant 0 : i32
    %c0_i32_1 = arith.constant 0 : i32
    return %c0_i32, %c0_i32_0 : i32, i32
  }
  func.func @transform_2(%arg0: i32, %arg1: memref<6xi32, #tpu.memory_space<smem>>) -> (i32, i32) {
    %c0_i32 = arith.constant 0 : i32
    %c0_i32_0 = arith.constant 0 : i32
    %c0_i32_1 = arith.constant 0 : i32
    return %c0_i32, %c0_i32_0 : i32, i32
  }
  func.func @transform_3(%arg0: i32, %arg1: memref<6xi32, #tpu.memory_space<smem>>) -> (i32, i32) {
    %c0_i32 = arith.constant 0 : i32
    %c0_i32_0 = arith.constant 0 : i32
    %c0_i32_1 = arith.constant 0 : i32
    return %c0_i32, %c0_i32_0 : i32, i32
  }
  func.func @transform_4(%arg0: i32, %arg1: memref<6xi32, #tpu.memory_space<smem>>) -> (i32, i32) {
    %c0_i32 = arith.constant 0 : i32
    %c0_i32_0 = arith.constant 0 : i32
    %c0_i32_1 = arith.constant 0 : i32
    return %c0_i32, %c0_i32_0 : i32, i32
  }
  func.func @transform_5(%arg0: i32, %arg1: memref<6xi32, #tpu.memory_space<smem>>) -> (i32, i32) {
    %c0_i32 = arith.constant 0 : i32
    %c0_i32_0 = arith.constant 0 : i32
    %c0_i32_1 = arith.constant 0 : i32
    return %c0_i32, %c0_i32_0 : i32, i32
  }
  func.func @transform_6(%arg0: i32, %arg1: memref<6xi32, #tpu.memory_space<smem>>) -> (i32, i32) {
    %c0_i32 = arith.constant 0 : i32
    %c0_i32_0 = arith.constant 0 : i32
    %c0_i32_1 = arith.constant 0 : i32
    return %c0_i32, %c0_i32_0 : i32, i32
  }
  func.func @transform_7(%arg0: i32, %arg1: memref<6xi32, #tpu.memory_space<smem>>) -> (i32, i32) {
    %c0_i32 = arith.constant 0 : i32
    %c0_i32_0 = arith.constant 0 : i32
    %c0_i32_1 = arith.constant 0 : i32
    return %c0_i32, %c0_i32_0 : i32, i32
  }
  func.func @transform_8(%arg0: i32, %arg1: memref<6xi32, #tpu.memory_space<smem>>) -> (i32, i32) {
    %c0_i32 = arith.constant 0 : i32
    %c0_i32_0 = arith.constant 0 : i32
    %c0_i32_1 = arith.constant 0 : i32
    return %c0_i32, %c0_i32_0 : i32, i32
  }
  func.func @transform_9(%arg0: i32, %arg1: memref<6xi32, #tpu.memory_space<smem>>) -> (i32, i32) {
    %c0_i32 = arith.constant 0 : i32
    %c0_i32_0 = arith.constant 0 : i32
    %c0_i32_1 = arith.constant 0 : i32
    return %c0_i32, %c0_i32_0 : i32, i32
  }
  func.func @transform_10(%arg0: i32, %arg1: memref<6xi32, #tpu.memory_space<smem>>) -> (i32, i32) {
    %c0_i32 = arith.constant 0 : i32
    %c0_i32_0 = arith.constant 0 : i32
    %c0_i32_1 = arith.constant 0 : i32
    return %c0_i32, %c0_i32_0 : i32, i32
  }
  func.func @transform_11(%arg0: i32, %arg1: memref<6xi32, #tpu.memory_space<smem>>) -> (i32, i32) {
    %c0_i32 = arith.constant 0 : i32
    %c0_i32_0 = arith.constant 0 : i32
    %c0_i32_1 = arith.constant 0 : i32
    return %c0_i32, %c0_i32_0 : i32, i32
  }
  func.func @transform_12(%arg0: i32, %arg1: memref<6xi32, #tpu.memory_space<smem>>) -> (i32, i32) {
    %c0_i32 = arith.constant 0 : i32
    %c0_i32_0 = arith.constant 0 : i32
    %c0_i32_1 = arith.constant 0 : i32
    return %c0_i32, %c0_i32_0 : i32, i32
  }
  func.func @transform_13(%arg0: i32, %arg1: memref<6xi32, #tpu.memory_space<smem>>) -> (i32, i32) {
    %c0_i32 = arith.constant 0 : i32
    %c0_i32_0 = arith.constant 0 : i32
    %c0_i32_1 = arith.constant 0 : i32
    return %c0_i32, %c0_i32_0 : i32, i32
  }
  func.func @transform_14(%arg0: i32, %arg1: memref<6xi32, #tpu.memory_space<smem>>) -> (i32, i32) {
    %c0_i32 = arith.constant 0 : i32
    %c0_i32_0 = arith.constant 0 : i32
    %c0_i32_1 = arith.constant 0 : i32
    return %c0_i32, %c0_i32_0 : i32, i32
  }
  func.func @transform_15(%arg0: i32, %arg1: memref<6xi32, #tpu.memory_space<smem>>) -> (i32, i32) {
    %c0_i32 = arith.constant 0 : i32
    %c0_i32_0 = arith.constant 0 : i32
    %c0_i32_1 = arith.constant 0 : i32
    return %c0_i32, %c0_i32_0 : i32, i32
  }
  func.func @transform_16(%arg0: i32, %arg1: memref<6xi32, #tpu.memory_space<smem>>) -> (i32, i32) {
    %c0_i32 = arith.constant 0 : i32
    %c0_i32_0 = arith.constant 0 : i32
    %c0_i32_1 = arith.constant 0 : i32
    return %c0_i32, %c0_i32_0 : i32, i32
  }
}

</mosaic_0001>

<bundles_post_ra>
// kernel: tpu_custom_call.1
= control target key start
LH: loop header
LB: loop body
LE: loop exit
PB: predicated region body
PF: predicated region fallthrough
CT: control target
= control target key end

     0   :  { %s1931_s27 = smov [#allocation5]   ;;  %s2655_s0 = inlined_call_operand.hbm [shape: s32[6], index: 0, kind: input, shape index: {}]   ;;  %s2656_s1 = inlined_call_operand.hbm [shape: f32[1,32], index: 1, kind: input, shape index: {}]   ;;  %s2657_s2 = inlined_call_operand.vmem [shape: f32[128,32], index: 2, kind: input, shape index: {}]   ;;  %s2658_s3 = inlined_call_operand.hbm [shape: f32[20,32], index: 3, kind: input, shape index: {}]   ;;  %s2659_s4 = inlined_call_operand.vmem [shape: f32[32,128], index: 4, kind: input, shape index: {}]   ;;  %s2660_s5 = inlined_call_operand.vmem [shape: f32[1,128], index: 5, kind: input, shape index: {}]   ;;  %s2661_s6 = inlined_call_operand.vmem [shape: f32[32,32], index: 6, kind: input, shape index: {}]   ;;  %s2662_s7 = inlined_call_operand.vmem [shape: f32[32,32], index: 7, kind: input, shape index: {}]   ;;  %s2663_s8 = inlined_call_operand.vmem [shape: f32[1,32], index: 8, kind: input, shape index: {}]   ;;  %s2664_s9 = inlined_call_operand.vmem [shape: f32[32,256], index: 9, kind: input, shape index: {}]   ;;  %s2665_s10 = inlined_call_operand.hbm [shape: f32[32,128], index: 10, kind: input, shape index: {}]   ;;  %s2666_s11 = inlined_call_operand.vmem [shape: f32[1,128], index: 11, kind: input, shape index: {}]   ;;  %s2667_s12 = inlined_call_operand.vmem [shape: f32[1,32], index: 12, kind: input, shape index: {}]   ;;  %s2668_s13 = inlined_call_operand.hbm [shape: f32[32,128], index: 13, kind: input, shape index: {}]   ;;  %s2669_s14 = inlined_call_operand.vmem [shape: f32[1,128], index: 14, kind: input, shape index: {}]   ;;  %s2670_s15 = inlined_call_operand.hbm [shape: f32[6,128], index: 15, kind: output, shape index: {0}]   ;;  %s2671_s16 = inlined_call_operand.hbm [shape: f32[6,128], index: 16, kind: output, shape index: {1}]   ;;  %s2672_s17 = inlined_call_operand.hbm [shape: f32[1,32], index: 17, kind: output, shape index: {2}]  }
   0x1   :  { %2674 = sst [smem:[#allocation24_spill]] %s2655_s0 }
   0x2   :  { %2675 = sst [smem:[#allocation25_spill]] %s2656_s1 }
   0x3   :  { %2676 = sst [smem:[#allocation26_spill]] %s2666_s11 }
   0x4   :  { %s2677_s26 = sld [smem:[#allocation24_spill]] }
   0xa   :  { %s24_s11 = sshll.u32 %s2677_s26, 4  ;;  %s25_s11 = int_to_ptr.hbm [resolvable:$true] %s24_s11 }
   0xb   :  { %27 = dma.hbm_to_smem %s25_s11, 16, %s1931_s27, [#allocation4] }
   0xc   :  { %1919 = dma.done.wait [#allocation4], 16 }
   0xd   :  { %1920 = vsyncadd [#allocation4], 4294967280 }
   0xe   :  { %30 = sfence }
   0xf   :  { %31 = vsyncpa [#allocation7], 0 }
  0x10   :  { %32 = vsyncpa [#allocation10], 0 }
  0x11   :  { %33 = vsyncpa [#allocation13], 0 }
  0x12   :  { %34 = vsyncpa [#allocation8], 0  ;;  %s53_s0 = sshll.u32 %s2658_s3, 4  ;;  %s54_s0 = int_to_ptr.hbm [resolvable:$true] %s53_s0 }
  0x13   :  { %35 = vsyncpa [#allocation16], 0  ;;  %s1932_s30 = smov [#allocation9]   ;;  %s2678_s20 = sld [smem:[#allocation25_spill]] }
  0x14   :  { %s55_s18 = sshll.u32 %s1932_s30, 4  ;;  %s1933_s21 = smov 128   ;;  %s56_s18 = int_to_ptr.vmem [resolvable:$true] %s55_s18 }
  0x15   :  { %s1934_s22 = smov 8   ;;  %s1935_s23 = smov [#allocation6]  }
  0x16   :  { %61 = dma.hbm_to_vmem [thread:$0]  %s54_s0, 384, %s56_s18, [#allocation10], %s1933_s21, %s1933_s21, %s1934_s22  }
  0x17   :  { %s43_s24 = sshll.u32 %s1935_s23, 4  ;;  %s78_s27 = sshll.u32 %s2665_s10, 4  ;;  %s44_s24 = int_to_ptr.vmem [resolvable:$true] %s43_s24  ;;  %s79_s27 = int_to_ptr.hbm [resolvable:$true] %s78_s27 }
  0x18   :  { %s95_s29 = sshll.u32 %s2668_s13, 4  ;;  %s1936_s30 = smov [#allocation11]   ;;  %s96_s29 = int_to_ptr.hbm [resolvable:$true] %s95_s29 }
  0x19   :  { %s41_s11 = sshll.u32 %s2678_s20, 4  ;;  %s80_s19 = sshll.u32 %s1936_s30, 4  ;;  %s42_s11 = int_to_ptr.hbm [resolvable:$true] %s41_s11  ;;  %s81_s19 = int_to_ptr.vmem [resolvable:$true] %s80_s19 }
  0x1a   :  { %46 = dma.hbm_to_vmem [thread:$0]  %s42_s11, 16, %s44_s24, [#allocation7]  }
  0x1b   :  { %86 = dma.hbm_to_vmem [thread:$0]  %s79_s27, 512, %s81_s19, [#allocation10], %s1933_s21, %s1933_s21, %s1934_s22  }
  0x1c   :  { %s1937_s0 = smov [#allocation12]  }
  0x1d   :  { %s97_s18 = sshll.u32 %s1937_s0, 4  ;;  %s98_s18 = int_to_ptr.vmem [resolvable:$true] %s97_s18 }
  0x1e   :  { %103 = dma.hbm_to_vmem [thread:$0]  %s96_s29, 512, %s98_s18, [#allocation13], %s1933_s21, %s1933_s21, %s1934_s22  }
  0x1f   :  { %1921 = dma.done.wait [#allocation7], 16  }
  0x20   :  { %1922 = vsyncadd [#allocation7], 4294967280 }
  0x21   :  { %1923 = dma.done.wait [#allocation10], 896  }
  0x22   :  { %1924 = vsyncadd [#allocation10], 4294966400 }
  0x23   :  { %1925 = dma.done.wait [#allocation13], 512  }
  0x24   :  { %1926 = vsyncadd [#allocation13], 4294966784  ;;  %s122_s10 = sld [smem:[#allocation5]]  ;;  %v2058_v0 = vld [vmem:[%s2664_s9 + $0x38] sm:$0xff]  ;;  %v2063_v1 = vld [vmem:[%s2664_s9 + $0x28] sm:$0xff]  ;;  %vm125_vm0 = vcmask 253952  }
  0x25   :  { %s1615_s1 = sld [smem:[#allocation5 + $0x1]]  ;;  %v151_v2 = vld [vmem:[%s2659_s4 + $0x18] sm:$0xff]  ;;  %252 = vmatpush.msra.mxu3 %v2058_v0  ;;  %v150_v4 = vld [vmem:[%s2659_s4 + $0x10] sm:$0xff]  ;;  %v2080_v5 = vld [vmem:[%s2664_s9 + $0x8] sm:$0xff]  ;;  %vm156_vm1 = vcmask 261120   ;;  %vm261_vm2 = vcmask 1040384  }
  0x26   :  { %s1616_s20 = sld [smem:[#allocation5 + $0x2]]  ;;  %172 = vmatpush.msra.mxu0 %v151_v2  ;;  %v2072_v3 = vld [vmem:[%s2664_s9 + $0x18] sm:$0xff]  ;;  %v149_v6 = vld [vmem:[%s2659_s4 + $0x8] sm:$0xff]  ;;  %v148_v7 = vld [vmem:[%s2659_s4] sm:$0xff]  ;;  %vm476_vm7 = vcmask 1041409   ;;  %vm694_vm12 = vcmask 1042434  }
  0x27   :  { %s2049_s11 = sld [smem:[#allocation5 + $0x3]]  ;;  %253 = vmatpush.msra.mxu3 %v2063_v1  ;;  %v2089_v8 = vld [vmem:[#allocation6] sm:$0x1]  ;;  %v1666_v16 = vld [vmem:[%s2660_s5] ss:$0 sm:$0xff]  ;;  %v2118_v22 = vld [vmem:[%s2657_s2 + $0x78] sm:$0xff] }
  0x28   :  { %s2051_s13 = sld [smem:[#allocation5 + $0x4]]  ;;  %173 = vmatpush.msra.mxu0 %v150_v4  ;;  %v2123_v23 = vld [vmem:[%s2657_s2 + $0x70] sm:$0xff]  ;;  %v2129_v24 = vld [vmem:[%s2657_s2 + $0x68] sm:$0xff]  ;;  %v2135_v25 = vld [vmem:[%s2657_s2 + $0x60] sm:$0xff] }
  0x29   :  { %s2053_s23 = sld [smem:[#allocation5 + $0x5]]  ;;  %254 = vmatpush.msra.mxu3 %v2072_v3  ;;  %v2141_v26 = vld [vmem:[%s2657_s2 + $0x58] sm:$0xff]  ;;  %v2147_v27 = vld [vmem:[%s2657_s2 + $0x50] sm:$0xff]  ;;  %v2153_v28 = vld [vmem:[%s2657_s2 + $0x48] sm:$0xff] }
  0x2a   :  { %s123_s22 = scalar_lea.vmem [#allocation9], %s122_s10  ;;  %174 = vmatpush.msra.mxu0 %v149_v6  ;;  %v2159_v29 = vld [vmem:[%s2657_s2 + $0x40] sm:$0xff]  ;;  %v2165_v30 = vld [vmem:[%s2657_s2 + $0x38] sm:$0xff]  ;;  %v2171_v31 = vld [vmem:[%s2657_s2 + $0x30] sm:$0xff] }
  0x2b   :  { %v124_v9 = vld [vmem:[%s123_s22] sm:$0x1]  ;;  %s128_s26 = scalar_lea.vmem [#allocation9], %s1615_s1  ;;  %255 = vmatpush.msra.mxu3 %v2080_v5  ;;  %v2177_v32 = vld [vmem:[%s2657_s2 + $0x28] sm:$0xff]  ;;  %v2191_v39 = vld [vmem:[%s2657_s2 + $0x18] sm:$0xff]  ;;  %s1588_s1 = sshll.u32 %s2672_s17, 4  ;;  %s1589_s1 = int_to_ptr.hbm [resolvable:$true] %s1588_s1 }
  0x2c   :  { %v129_v10 = vld [vmem:[%s128_s26] sm:$0x1]  ;;  %s132_s27 = scalar_lea.vmem [#allocation9], %s1616_s20  ;;  %126 = vst.msk [vmem:[#allocation2] sm:$0x1] %vm125_vm0, %v124_v9  ;;  %175 = vmatpush.msra.mxu0 %v148_v7  ;;  %1623 = vmatmul.msk.f32.vlgmr.msra.gmra.mxu3 %vm156_vm1, %v2089_v8  ;;  %v2196_v40 = vld [vmem:[%s2657_s2 + $0x10] sm:$0xff] }
  0x2d   :  { %v133_v11 = vld [vmem:[%s132_s27] sm:$0x1]  ;;  %130 = vst.msk [vmem:[#allocation2 + $0x1] sm:$0x1] %vm125_vm0, %v129_v10  ;;  %s136_s4 = scalar_lea.vmem [#allocation9], %s2049_s11  ;;  %v2202_v41 = vld [vmem:[%s2657_s2 + $0x8] sm:$0xff] }
  0x2e   :  { %v137_v12 = vld [vmem:[%s136_s4] sm:$0x1]  ;;  %s140_s3 = scalar_lea.vmem [#allocation9], %s2051_s13  ;;  %134 = vst.msk [vmem:[#allocation2 + $0x2] sm:$0x1] %vm125_vm0, %v133_v11  ;;  %290 = vmatpush.msrb.mxu0 %v2118_v22  ;;  %v183_v43 = vld [vmem:[%s2661_s6 + $0x18] sm:$0xff] }
  0x2f   :  { %v141_v13 = vld [vmem:[%s140_s3] sm:$0x1]  ;;  %138 = vst.msk [vmem:[#allocation2 + $0x3] sm:$0x1] %vm125_vm0, %v137_v12  ;;  %s144_s10 = scalar_lea.vmem [#allocation9], %s2053_s23  ;;  %v182_v44 = vld [vmem:[%s2661_s6 + $0x10] sm:$0xff]  ;;  %200 = vmatpush.msra.mxu1 %v183_v43 }
  0x30   :  { %v145_v14 = vld [vmem:[%s144_s10] sm:$0x1]  ;;  %142 = vst.msk [vmem:[#allocation2 + $0x4] sm:$0x1] %vm125_vm0, %v141_v13  ;;  %291 = vmatpush.msrb.mxu0 %v2123_v23  ;;  %v2221_v45 = vld [vmem:[%s2664_s9 + $0x30] sm:$0xff]  ;;  %v181_v46 = vld [vmem:[%s2661_s6 + $0x8] sm:$0xff] }
  0x31   :  { %146 = vst.msk [vmem:[#allocation2 + $0x5] sm:$0x1] %vm125_vm0, %v145_v14  ;;  %v2185_v38 = vld [vmem:[%s2657_s2 + $0x20] sm:$0xff]  ;;  %v2229_v47 = vld [vmem:[%s2662_s7 + $0x18] sm:$0xff]  ;;  %444 = vmatpush.msrb.mxu3 %v2221_v45  ;;  %201 = vmatpush.msra.mxu1 %v182_v44  ;;  %v2244_v50 = vld [vmem:[%s2662_s7 + $0x10] sm:$0xff]  ;;  %s1938_s27 = smov 64  }
  0x32   :  { %292 = vmatpush.msrb.mxu0 %v2129_v24  ;;  %v2208_v42 = vld [vmem:[%s2657_s2] sm:$0xff]  ;;  %v2250_v51 = vld [vmem:[%s2664_s9 + $0x10] sm:$0xff]  ;;  %v2256_v52 = vld [vmem:[%s2662_s7 + $0x8] sm:$0xff]  ;;  %v411_v9 = vperm.slane %v2089_v8, 0  ;;  %s1939_s4 = smov 32   ;;  %s2679_s20 = sld [smem:[#allocation26_spill]] }
  0x33   :  { %v2235_v48 = vld [vmem:[%s2664_s9 + $0x20] sm:$0xff]  ;;  %202 = vmatpush.msra.mxu1 %v181_v46  ;;  %v2310_v6 = vld [vmem:[#allocation11 + $0x8] sm:$0xff]  ;;  %v2314_v7 = vld [vmem:[#allocation11] sm:$0xff]  ;;  %s1940_s11 = smov 96   ;;  %s1566_s23 = sshll.u32 %s2670_s15, 4  ;;  %s1567_s23 = int_to_ptr.hbm [resolvable:$true] %s1566_s23 }
  0x34   :  { %293 = vmatpush.msrb.mxu0 %v2135_v25  ;;  %v180_v49 = vld [vmem:[%s2661_s6] sm:$0xff]  ;;  %445 = vmatpush.msrb.mxu3 %v2235_v48 }
  0x35   :  { %203 = vmatpush.msra.mxu1 %v180_v49  ;;  %v2262_v53 = vld [vmem:[%s2664_s9] sm:$0xff] }
  0x36   :  { %294 = vmatpush.msrb.mxu0 %v2141_v26  ;;  %446 = vmatpush.msrb.mxu3 %v2250_v51  ;;  %v2272_v54 = vld [vmem:[%s2662_s7] sm:$0xff] }
  0x37   :  { %232 = vmatpush.msrb.mxu1 %v2221_v45  ;;  %v1667_v58 = vld [vmem:[%s2667_s12] ss:$0 sm:$0xff]  ;;  %v2301_v60 = vld [vmem:[#allocation11 + $0x18] sm:$0xff] }
  0x38   :  { %v2104_v15 = vld [vmem:[#allocation2] sm:$0x3f]  ;;  %295 = vmatpush.msrb.mxu0 %v2147_v27  ;;  %447 = vmatpush.msrb.mxu3 %v2262_v53 }
  0x39   :  { %1620 = vmatmul.msk.f32.vlgmr.msra.gmra.mxu0 %vm156_vm1, %v2104_v15  ;;  %1621 = vmatmul.msk.f32.vlgmr.msra.gmra.mxu1 %vm156_vm1, %v2104_v15  ;;  %v2306_v4 = vld [vmem:[#allocation11 + $0x10] sm:$0xff] }
  0x3a   :  { %296 = vmatpush.msrb.mxu0 %v2153_v28  ;;  %547 = vmatpush.msra.mxu3 %v2229_v47  ;;  %v343_v14 = vld [vmem:[%s2679_s20] sm:$0x1] }
  0x3b   :  { %233 = vmatpush.msrb.mxu1 %v2235_v48  ;;  %390 = vrot.lane.b32.xlu1 %v1667_v58, %s1938_s27 }
  0x3c   :  { %297 = vmatpush.msrb.mxu0 %v2159_v29  ;;  %548 = vmatpush.msra.mxu3 %v2244_v50 }
  0x3d   :  { %234 = vmatpush.msrb.mxu1 %v2250_v51  ;;  %359 = vmatpush.msra.mxu2 %v2301_v60 }
  0x3e   :  { %298 = vmatpush.msrb.mxu0 %v2165_v30  ;;  %549 = vmatpush.msra.mxu3 %v2256_v52 }
  0x3f   :  { %235 = vmatpush.msrb.mxu1 %v2262_v53  ;;  %360 = vmatpush.msra.mxu2 %v2306_v4 }
  0x40   :  { %299 = vmatpush.msrb.mxu0 %v2171_v31  ;;  %550 = vmatpush.msra.mxu3 %v2272_v54 }
  0x41   :  { %1622 = vmatmul.msk.f32.vlgmr.msrb.gmra.mxu1 %vm156_vm1, %v2089_v8  ;;  %361 = vmatpush.msra.mxu2 %v2310_v6  ;;  %v1668_v8 = vld [vmem:[%s2663_s8] ss:$0 sm:$0xff] }
  0x42   :  { %300 = vmatpush.msrb.mxu0 %v2177_v32  ;;  %329 = vmatpush.msra.mxu1 %v2229_v47 }
  0x43   :  { %362 = vmatpush.msra.mxu2 %v2314_v7 }
  0x44   :  { %301 = vmatpush.msrb.mxu0 %v2185_v38  ;;  %330 = vmatpush.msra.mxu1 %v2244_v50 }
  0x45   :  { %508 = vmatpush.msrb.mxu2 %v2118_v22 }
  0x46   :  { %302 = vmatpush.msrb.mxu0 %v2191_v39  ;;  %331 = vmatpush.msra.mxu1 %v2256_v52 }
  0x47   :  { %509 = vmatpush.msrb.mxu2 %v2123_v23 }
  0x48   :  { %303 = vmatpush.msrb.mxu0 %v2196_v40  ;;  %332 = vmatpush.msra.mxu1 %v2272_v54 }
  0x49   :  { %510 = vmatpush.msrb.mxu2 %v2129_v24 }
  0x4a   :  { %304 = vmatpush.msrb.mxu0 %v2202_v41  ;;  %464 = vmatpush.msrb.mxu1 %v2058_v0 }
  0x4b   :  { %511 = vmatpush.msrb.mxu2 %v2135_v25 }
  0x4c   :  { %305 = vmatpush.msrb.mxu0 %v2208_v42  ;;  %465 = vmatpush.msrb.mxu1 %v2063_v1 }
  0x4d   :  { %512 = vmatpush.msrb.mxu2 %v2141_v26 }
  0x4e   :  { %765 = vmatpush.msra.mxu0 %v2229_v47  ;;  %466 = vmatpush.msrb.mxu1 %v2072_v3 }
  0x4f   :  { %513 = vmatpush.msrb.mxu2 %v2147_v27 }
  0x50   :  { %766 = vmatpush.msra.mxu0 %v2244_v50  ;;  %467 = vmatpush.msrb.mxu1 %v2080_v5 }
  0x51   :  { %514 = vmatpush.msrb.mxu2 %v2153_v28 }
  0x52   :  { %767 = vmatpush.msra.mxu0 %v2256_v52 }
  0x53   :  { %515 = vmatpush.msrb.mxu2 %v2159_v29 }
  0x54   :  { %768 = vmatpush.msra.mxu0 %v2272_v54 }
  0x55   :  { %516 = vmatpush.msrb.mxu2 %v2165_v30 }
  0x57   :  { %517 = vmatpush.msrb.mxu2 %v2171_v31 }
  0x59   :  { %518 = vmatpush.msrb.mxu2 %v2177_v32 }
  0x5b   :  { %519 = vmatpush.msrb.mxu2 %v2185_v38 }
  0x5d   :  { %520 = vmatpush.msrb.mxu2 %v2191_v39 }
  0x5f   :  { %521 = vmatpush.msrb.mxu2 %v2196_v40 }
  0x61   :  { %522 = vmatpush.msrb.mxu2 %v2202_v41 }
  0x63   :  { %523 = vmatpush.msrb.mxu2 %v2208_v42 }
  0xad   :  { %v391_v63 = vpop.permute.xlu1 %390 }
  0xaf   :  { %v257_v18 = vpop.f32.mrf.mxu3 }
  0xb6   :  { %v177_v17 = vpop.f32.mrf.mxu0  ;;  %v205_v61 = vpop.f32.mrf.mxu1 }
  0xb7   :  { %v2111_v19 = vadd.f32 %v1666_v16, %v177_v17  ;;  %v2335_v10 = vadd.f32 %v1668_v8, %v205_v61 }
  0xb9   :  { %v260_v20 = vadd.f32 %v257_v18, %v2111_v19 }
  0xbb   :  { %v262_v21 = vsel %vm261_vm2, %v260_v20, -inf }
  0xbc   :  { %263 = vmax.xlane.f32.xlu0 %v262_v21 }
  0xbe   :  { %v237_v62 = vpop.f32.mrf.mxu1 }
  0xbf   :  { %v393_v2 = vadd.f32 %v391_v63, %v237_v62 }
  0xc1   :  { %395 = vrot.lane.b32.xlu1 %v393_v2, %s1938_s27 }
 0x12f   :  { %v264_v33 = vpop.xlane.xlu0 %263 }
 0x130   :  { %v265_v34 = vsub.f32 %v260_v20, %v264_v33 }
 0x132   :  { %v266_v35 = vmul.f32 1.442695, %v265_v34 }
 0x134   :  { %1675 = vpow2.f32 %v266_v35 }
 0x13a   :  { %v1676_v36 = vpop.eup %1675 }
 0x13b   :  { %v268_v37 = vsel %vm261_vm2, %v1676_v36, 0.0 }
 0x13c   :  { %269 = vadd.xlane.f32.xlu0 %v268_v37 }
 0x150   :  { %412 = vrot.lane.b32.xlu0 %v411_v9, %s1939_s4  ;;  %s1577_s4 = sshll.u32 %s2671_s16, 4  ;;  %s1578_s4 = int_to_ptr.hbm [resolvable:$true] %s1577_s4 }
 0x1af   :  { %v270_v55 = vpop.xlane.xlu0 %269 }
 0x1b0   :  { %1677 = vrcp.f32 %v270_v55  ;;  %v396_v55 = vpop.permute.xlu1 %395 }
 0x1b6   :  { %v1678_v56 = vpop.eup %1677 }
 0x1b7   :  { %v272_v57 = vmul.f32 %v1678_v56, %v1676_v36 }
 0x1b9   :  { %273 = vst [vmem:[#allocation15] sm:$0x1] %v272_v57  ;;  %306 = vmatmul.f32.vlgmr.msrb.gmra.mxu0 %v272_v57 }
 0x1ba   :  { %880 = vmatpush.msrb.mxu0 %v2221_v45 }
 0x1bc   :  { %881 = vmatpush.msrb.mxu0 %v2235_v48 }
 0x1be   :  { %882 = vmatpush.msrb.mxu0 %v2250_v51 }
 0x1c0   :  { %883 = vmatpush.msrb.mxu0 %v2262_v53 }
 0x236   :  { %v307_v59 = vpop.f32.mrf.mxu0 }
 0x237   :  { %1624 = vmatmul.msk.f32.vlgmr.msra.gmra.mxu1 %vm156_vm1, %v307_v59 }
 0x238   :  { %581 = vmatpush.msra.mxu1 %v2301_v60 }
 0x23a   :  { %582 = vmatpush.msra.mxu1 %v2306_v4 }
 0x23c   :  { %583 = vmatpush.msra.mxu1 %v2310_v6 }
 0x23e   :  { %584 = vmatpush.msra.mxu1 %v2314_v7 }
 0x2b4   :  { %v334_v11 = vpop.f32.mrf.mxu1 }
 0x2b5   :  { %v337_v12 = vadd.f32 %v334_v11, %v2335_v10 }
 0x2b7   :  { %v338_v13 = vmax.f32 %v337_v12, 0.0  ;;  %v1669_v12 = vld [vmem:[%s2667_s12] ss:$0 sm:$0xff] }
 0x2b8   :  { %612 = vrot.lane.b32.xlu0 %v1669_v12, %s1938_s27 }
 0x2b9   :  { %1625 = vmatmul.msk.f32.vlgmr.msra.gmra.mxu2 %vm156_vm1, %v338_v13 }
 0x2ba   :  { %944 = vmatpush.msra.mxu2 %v2118_v22 }
 0x2bc   :  { %945 = vmatpush.msra.mxu2 %v2123_v23 }
 0x2be   :  { %946 = vmatpush.msra.mxu2 %v2129_v24 }
 0x2c0   :  { %947 = vmatpush.msra.mxu2 %v2135_v25 }
 0x2c2   :  { %948 = vmatpush.msra.mxu2 %v2141_v26 }
 0x2c4   :  { %949 = vmatpush.msra.mxu2 %v2147_v27 }
 0x2c6   :  { %950 = vmatpush.msra.mxu2 %v2153_v28 }
 0x2c8   :  { %951 = vmatpush.msra.mxu2 %v2159_v29 }
 0x2ca   :  { %952 = vmatpush.msra.mxu2 %v2165_v30 }
 0x2cc   :  { %953 = vmatpush.msra.mxu2 %v2171_v31 }
 0x2ce   :  { %954 = vmatpush.msra.mxu2 %v2177_v32 }
 0x2d0   :  { %955 = vmatpush.msra.mxu2 %v2185_v38 }
 0x2d2   :  { %956 = vmatpush.msra.mxu2 %v2191_v39 }
 0x2d4   :  { %957 = vmatpush.msra.mxu2 %v2196_v40 }
 0x2d6   :  { %958 = vmatpush.msra.mxu2 %v2202_v41 }
 0x2d8   :  { %959 = vmatpush.msra.mxu2 %v2208_v42 }
 0x33c   :  { %v364_v15 = vpop.f32.mrf.mxu2 }
 0x33d   :  { %v365_v16 = vadd.f32 %v364_v15, %v343_v14 }
 0x33f   :  { %v367_v17 = vadd.f32 %v365_v16, %v237_v62  ;;  %v413_v62 = vpop.permute.xlu0 %412 }
 0x341   :  { %v1626_v18 = vmul.f32 -1.442695, %v367_v17 }
 0x343   :  { %1679 = vpow2.f32 %v1626_v18 }
 0x347   :  { %v613_v17 = vpop.permute.xlu0 %612 }
 0x349   :  { %v1680_v20 = vpop.eup %1679 }
 0x34a   :  { %v371_v21 = vadd.f32 1.0, %v1680_v20 }
 0x34c   :  { %1681 = vrcp.f32 %v371_v21  ;;  %v383_v36 = vand.u32 2147483648, %v371_v21  ;;  %v381_v43 = vand.u32 2147483647, %v371_v21  ;;  %vm377_vm4 = vweird.f32 %v371_v21 }
 0x34e   :  { %v384_v46 = vor.u32 1.1754944e-38, %v383_v36  ;;  %vm382_vm6 = vcmp.eq.f32.partialorder %v381_v43, 8.507059e+37 }
 0x352   :  { %v1682_v33 = vpop.eup %1681 }
 0x353   :  { %v373_v34 = vmul.f32 %v1682_v33, %v371_v21  ;;  %vm378_vm3 = vweird.f32 %v1682_v33 }
 0x354   :  { %vm379_vm5 = vmor %vm377_vm4, %vm378_vm3  ;;  %vm912_vm3 = vcmask 1043459  }
 0x355   :  { %v374_v35 = vsub.f32 1.0, %v373_v34 }
 0x357   :  { %v375_v37 = vmul.f32 %v1682_v33, %v374_v35 }
 0x359   :  { %v376_v44 = vadd.f32 %v1682_v33, %v375_v37 }
 0x35b   :  { %v380_v49 = vsel %vm379_vm5, %v1682_v33, %v376_v44 }
 0x35c   :  { %v385_v56 = vsel %vm382_vm6, %v384_v46, %v380_v49 }
 0x35d   :  { %v398_v57 = vmul.f32 %v396_v55, %v385_v56  ;;  %v405_v63 = vsub.f32 1.0, %v385_v56  ;;  %v415_v9 = vmul.f32 %v413_v62, %v385_v56 }
 0x35f   :  { %400 = vrot.lane.b32.xlu2 %v398_v57, %s1938_s27 }
 0x3b9   :  { %v401_v58 = vpop.permute.xlu2 %400 }
 0x3ba   :  { %v403_v59 = vadd.f32 %v401_v58, %v365_v16 }
 0x3bc   :  { %1683 = vtanh.f32 %v403_v59 }
 0x3c2   :  { %v1684_v61 = vpop.eup %1683 }
 0x3c3   :  { %407 = vrot.lane.b32.xlu2 %v1684_v61, %s1940_s11 }
 0x41d   :  { %v408_v2 = vpop.permute.xlu2 %407 }
 0x41e   :  { %v410_v8 = vmul.f32 %v408_v2, %v405_v63 }
 0x420   :  { %v2363_v11 = vadd.f32 %v415_v9, %v410_v8 }
 0x422   :  { %418 = vrot.lane.b32.xlu1 %v2363_v11, %s1940_s11 }
 0x494   :  { %v419_v13 = vpop.permute.xlu1 %418 }
 0x495   :  { %421 = vst.msk [vmem:[#allocation3] sm:$0x1] %vm125_vm0, %v419_v13  ;;  %1627 = vmatmul.msk.f32.vlgmr.msrb.gmra.mxu3 %vm156_vm1, %v419_v13  ;;  %1628 = vmatmul.msk.f32.vlgmr.msrb.gmra.mxu1 %vm156_vm1, %v419_v13 }
 0x496   :  { %682 = vmatpush.msrb.mxu1 %v2058_v0  ;;  %662 = vmatpush.msrb.mxu3 %v2221_v45 }
 0x498   :  { %683 = vmatpush.msrb.mxu1 %v2063_v1  ;;  %663 = vmatpush.msrb.mxu3 %v2235_v48 }
 0x49a   :  { %684 = vmatpush.msrb.mxu1 %v2072_v3  ;;  %664 = vmatpush.msrb.mxu3 %v2250_v51 }
 0x49c   :  { %685 = vmatpush.msrb.mxu1 %v2080_v5  ;;  %665 = vmatpush.msrb.mxu3 %v2262_v53 }
 0x512   :  { %v469_v14 = vpop.f32.mrf.mxu1 }
 0x513   :  { %v473_v15 = vrot.slane %v469_v14, 7 }
 0x515   :  { %v475_v16 = vadd.f32 %v473_v15, %v2111_v19 }
 0x517   :  { %v477_v18 = vsel %vm476_vm7, %v475_v16, -inf }
 0x518   :  { %478 = vmax.xlane.f32.xlu2 %v477_v18  ;;  %v449_v20 = vpop.f32.mrf.mxu3 }
 0x519   :  { %v615_v21 = vadd.f32 %v613_v17, %v449_v20 }
 0x51b   :  { %617 = vrot.lane.b32.xlu0 %v615_v21, %s1938_s27 }
 0x58b   :  { %v479_v33 = vpop.xlane.xlu2 %478 }
 0x58c   :  { %v480_v34 = vsub.f32 %v475_v16, %v479_v33 }
 0x58d   :  { %v618_v62 = vpop.permute.xlu0 %617 }
 0x58e   :  { %v481_v35 = vmul.f32 1.442695, %v480_v34  ;;  %v1670_v34 = vld [vmem:[%s2667_s12] ss:$0 sm:$0xff] }
 0x590   :  { %1685 = vpow2.f32 %v481_v35 }
 0x596   :  { %v1686_v36 = vpop.eup %1685 }
 0x597   :  { %v483_v37 = vsel %vm476_vm7, %v1686_v36, 0.0 }
 0x598   :  { %484 = vadd.xlane.f32.xlu1 %v483_v37 }
 0x60b   :  { %v485_v43 = vpop.xlane.xlu1 %484 }
 0x60c   :  { %1687 = vrcp.f32 %v485_v43 }
 0x612   :  { %v1688_v44 = vpop.eup %1687 }
 0x613   :  { %v487_v46 = vmul.f32 %v1688_v44, %v1686_v36 }
 0x615   :  { %488 = vst [vmem:[#allocation15] sm:$0x2] %v487_v46  ;;  %v506_v49 = vrot.slane %v487_v46, 1 }
 0x617   :  { %524 = vmatmul.f32.vlgmr.msrb.gmra.mxu2 %v506_v49 }
 0x69a   :  { %v525_v55 = vpop.f32.mrf.mxu2 }
 0x69b   :  { %1629 = vmatmul.msk.f32.vlgmr.msra.gmra.mxu3 %vm156_vm1, %v525_v55 }
 0x69c   :  { %726 = vmatpush.msra.mxu3 %v2118_v22 }
 0x69e   :  { %727 = vmatpush.msra.mxu3 %v2123_v23 }
 0x6a0   :  { %728 = vmatpush.msra.mxu3 %v2129_v24 }
 0x6a2   :  { %729 = vmatpush.msra.mxu3 %v2135_v25 }
 0x6a4   :  { %730 = vmatpush.msra.mxu3 %v2141_v26 }
 0x6a6   :  { %731 = vmatpush.msra.mxu3 %v2147_v27  ;;  %v564_v27 = vld [vmem:[%s2679_s20] sm:$0x1] }
 0x6a8   :  { %732 = vmatpush.msra.mxu3 %v2153_v28 }
 0x6aa   :  { %733 = vmatpush.msra.mxu3 %v2159_v29 }
 0x6ac   :  { %734 = vmatpush.msra.mxu3 %v2165_v30 }
 0x6ae   :  { %735 = vmatpush.msra.mxu3 %v2171_v31 }
 0x6b0   :  { %736 = vmatpush.msra.mxu3 %v2177_v32 }
 0x6b2   :  { %737 = vmatpush.msra.mxu3 %v2185_v38 }
 0x6b4   :  { %738 = vmatpush.msra.mxu3 %v2191_v39 }
 0x6b6   :  { %739 = vmatpush.msra.mxu3 %v2196_v40 }
 0x6b8   :  { %740 = vmatpush.msra.mxu3 %v2202_v41 }
 0x6ba   :  { %741 = vmatpush.msra.mxu3 %v2208_v42 }
 0x71e   :  { %v552_v22 = vpop.f32.mrf.mxu3 }
 0x71f   :  { %v556_v23 = vrot.slane %v552_v22, 7 }
 0x721   :  { %v558_v24 = vadd.f32 %v556_v23, %v2335_v10 }
 0x723   :  { %v559_v25 = vmax.f32 %v558_v24, 0.0 }
 0x725   :  { %v566_v26 = vrot.slane %v559_v25, 1 }
 0x727   :  { %1630 = vmatmul.msk.f32.vlgmr.msra.gmra.mxu1 %vm156_vm1, %v566_v26 }
 0x728   :  { %799 = vmatpush.msra.mxu1 %v2301_v60 }
 0x72a   :  { %800 = vmatpush.msra.mxu1 %v2306_v4 }
 0x72c   :  { %801 = vmatpush.msra.mxu1 %v2310_v6 }
 0x72e   :  { %802 = vmatpush.msra.mxu1 %v2314_v7 }
 0x7a4   :  { %v586_v28 = vpop.f32.mrf.mxu1 }
 0x7a5   :  { %v587_v29 = vadd.f32 %v586_v28, %v564_v27 }
 0x7a7   :  { %v589_v30 = vadd.f32 %v587_v29, %v449_v20 }
 0x7a9   :  { %v1631_v31 = vmul.f32 -1.442695, %v589_v30 }
 0x7ab   :  { %1689 = vpow2.f32 %v1631_v31 }
 0x7b1   :  { %v1690_v32 = vpop.eup %1689 }
 0x7b2   :  { %v593_v38 = vadd.f32 1.0, %v1690_v32 }
 0x7b4   :  { %1691 = vrcp.f32 %v593_v38  ;;  %v605_v42 = vand.u32 2147483648, %v593_v38  ;;  %v603_v57 = vand.u32 2147483647, %v593_v38  ;;  %vm599_vm9 = vweird.f32 %v593_v38 }
 0x7b6   :  { %v606_v59 = vor.u32 1.1754944e-38, %v605_v42  ;;  %vm604_vm11 = vcmp.eq.f32.partialorder %v603_v57, 8.507059e+37 }
 0x7ba   :  { %v1692_v39 = vpop.eup %1691 }
 0x7bb   :  { %v595_v40 = vmul.f32 %v1692_v39, %v593_v38  ;;  %vm600_vm8 = vweird.f32 %v1692_v39 }
 0x7bc   :  { %vm601_vm10 = vmor %vm599_vm9, %vm600_vm8  ;;  %vm1130_vm8 = vcmask 1044484  }
 0x7bd   :  { %v596_v41 = vsub.f32 1.0, %v595_v40 }
 0x7bf   :  { %v597_v56 = vmul.f32 %v1692_v39, %v596_v41 }
 0x7c1   :  { %v598_v58 = vadd.f32 %v1692_v39, %v597_v56 }
 0x7c3   :  { %v602_v61 = vsel %vm601_vm10, %v1692_v39, %v598_v58 }
 0x7c4   :  { %v607_v63 = vsel %vm604_vm11, %v606_v59, %v602_v61 }
 0x7c5   :  { %v620_v2 = vmul.f32 %v618_v62, %v607_v63  ;;  %v627_v13 = vsub.f32 1.0, %v607_v63  ;;  %v633_v15 = vmul.f32 %v607_v63, %v2363_v11 }
 0x7c7   :  { %622 = vrot.lane.b32.xlu0 %v620_v2, %s1938_s27 }
 0x839   :  { %v623_v9 = vpop.permute.xlu0 %622 }
 0x83a   :  { %v625_v8 = vadd.f32 %v623_v9, %v587_v29 }
 0x83c   :  { %1693 = vtanh.f32 %v625_v8  ;;  %v1671_v8 = vld [vmem:[%s2667_s12] ss:$0 sm:$0xff] }
 0x842   :  { %v1694_v12 = vpop.eup %1693 }
 0x843   :  { %629 = vrot.lane.b32.xlu2 %v1694_v12, %s1940_s11 }
 0x89d   :  { %v630_v14 = vpop.permute.xlu2 %629 }
 0x89e   :  { %v632_v16 = vmul.f32 %v630_v14, %v627_v13 }
 0x8a0   :  { %v2413_v17 = vadd.f32 %v633_v15, %v632_v16 }
 0x8a2   :  { %636 = vrot.lane.b32.xlu0 %v2413_v17, %s1940_s11 }
 0x914   :  { %v637_v18 = vpop.permute.xlu0 %636 }
 0x915   :  { %639 = vst.msk [vmem:[#allocation3 + $0x1] sm:$0x1] %vm125_vm0, %v637_v18  ;;  %1632 = vmatmul.msk.f32.vlgmr.msrb.gmra.mxu3 %vm156_vm1, %v637_v18  ;;  %1633 = vmatmul.msk.f32.vlgmr.msrb.gmra.mxu1 %vm156_vm1, %v637_v18 }
 0x916   :  { %900 = vmatpush.msrb.mxu1 %v2058_v0 }
 0x918   :  { %901 = vmatpush.msrb.mxu1 %v2063_v1 }
 0x91a   :  { %902 = vmatpush.msrb.mxu1 %v2072_v3 }
 0x91c   :  { %903 = vmatpush.msrb.mxu1 %v2080_v5 }
 0x992   :  { %v687_v11 = vpop.f32.mrf.mxu1 }
 0x993   :  { %v691_v20 = vrot.slane %v687_v11, 6 }
 0x995   :  { %v693_v21 = vadd.f32 %v691_v20, %v2111_v19 }
 0x997   :  { %v695_v33 = vsel %vm694_vm12, %v693_v21, -inf }
 0x998   :  { %696 = vmax.xlane.f32.xlu1 %v695_v33  ;;  %v667_v5 = vpop.f32.mrf.mxu3 }
 0x9b1   :  { %830 = vrot.lane.b32.xlu1 %v1670_v34, %s1938_s27 }
 0xa0b   :  { %v697_v0 = vpop.xlane.xlu1 %696 }
 0xa0c   :  { %v698_v35 = vsub.f32 %v693_v21, %v697_v0 }
 0xa0e   :  { %v699_v1 = vmul.f32 1.442695, %v698_v35 }
 0xa10   :  { %1695 = vpow2.f32 %v699_v1 }
 0xa16   :  { %v1696_v3 = vpop.eup %1695 }
 0xa17   :  { %v701_v36 = vsel %vm694_vm12, %v1696_v3, 0.0 }
 0xa18   :  { %702 = vadd.xlane.f32.xlu0 %v701_v36 }
 0xa23   :  { %v831_v37 = vpop.permute.xlu1 %830 }
 0xa24   :  { %v833_v43 = vadd.f32 %v831_v37, %v667_v5 }
 0xa26   :  { %835 = vrot.lane.b32.xlu2 %v833_v43, %s1938_s27  ;;  %v1000_v43 = vld [vmem:[%s2679_s20] sm:$0x1] }
 0xa2c   :  { %1048 = vrot.lane.b32.xlu0 %v1671_v8, %s1938_s27  ;;  %v1157_v8 = vld [vmem:[%s2657_s2 + $0x70] sm:$0xff] }
 0xa80   :  { %v836_v41 = vpop.permute.xlu2 %835 }
 0xa8b   :  { %v703_v44 = vpop.xlane.xlu0 %702 }
 0xa8c   :  { %1697 = vrcp.f32 %v703_v44 }
 0xa92   :  { %v1698_v46 = vpop.eup %1697 }
 0xa93   :  { %v705_v49 = vmul.f32 %v1698_v46, %v1696_v3 }
 0xa95   :  { %706 = vst [vmem:[#allocation15] sm:$0x4] %v705_v49  ;;  %v724_v55 = vrot.slane %v705_v49, 2 }
 0xa97   :  { %742 = vmatmul.f32.vlgmr.msra.gmra.mxu3 %v724_v55 }
 0xa9e   :  { %v1049_v13 = vpop.permute.xlu0 %1048 }
 0xb1a   :  { %v743_v22 = vpop.f32.mrf.mxu3 }
 0xb1b   :  { %1634 = vmatmul.msk.f32.vlgmr.msra.gmra.mxu0 %vm156_vm1, %v743_v22 }
 0xb1c   :  { %983 = vmatpush.msra.mxu0 %v2229_v47  ;;  %v782_v47 = vld [vmem:[%s2679_s20] sm:$0x1] }
 0xb1e   :  { %984 = vmatpush.msra.mxu0 %v2244_v50 }
 0xb20   :  { %985 = vmatpush.msra.mxu0 %v2256_v52 }
 0xb22   :  { %986 = vmatpush.msra.mxu0 %v2272_v54 }
 0xb98   :  { %v770_v23 = vpop.f32.mrf.mxu0 }
 0xb99   :  { %v774_v24 = vrot.slane %v770_v23, 6 }
 0xb9b   :  { %v776_v25 = vadd.f32 %v774_v24, %v2335_v10 }
 0xb9d   :  { %v777_v26 = vmax.f32 %v776_v25, 0.0 }
 0xb9f   :  { %v784_v27 = vrot.slane %v777_v26, 2 }
 0xba1   :  { %1635 = vmatmul.msk.f32.vlgmr.msra.gmra.mxu1 %vm156_vm1, %v784_v27 }
 0xba2   :  { %1017 = vmatpush.msra.mxu1 %v2301_v60 }
 0xba4   :  { %1018 = vmatpush.msra.mxu1 %v2306_v4 }
 0xba6   :  { %1019 = vmatpush.msra.mxu1 %v2310_v6 }
 0xba8   :  { %1020 = vmatpush.msra.mxu1 %v2314_v7 }
 0xc1e   :  { %v804_v50 = vpop.f32.mrf.mxu1 }
 0xc1f   :  { %v805_v52 = vadd.f32 %v804_v50, %v782_v47 }
 0xc21   :  { %v807_v54 = vadd.f32 %v805_v52, %v667_v5 }
 0xc23   :  { %v1636_v28 = vmul.f32 -1.442695, %v807_v54 }
 0xc25   :  { %1699 = vpow2.f32 %v1636_v28 }
 0xc2b   :  { %v1700_v29 = vpop.eup %1699 }
 0xc2c   :  { %v811_v30 = vadd.f32 1.0, %v1700_v29 }
 0xc2e   :  { %1701 = vrcp.f32 %v811_v30  ;;  %v823_v4 = vand.u32 2147483648, %v811_v30  ;;  %v821_v6 = vand.u32 2147483647, %v811_v30  ;;  %vm817_vm14 = vweird.f32 %v811_v30 }
 0xc30   :  { %v824_v39 = vor.u32 1.1754944e-38, %v823_v4  ;;  %vm822_vm2 = vcmp.eq.f32.partialorder %v821_v6, 8.507059e+37  ;;  %v2480_v6 = vld [vmem:[%s2664_s9 + $0x28] sm:$0xff] }
 0xc34   :  { %v1702_v31 = vpop.eup %1701 }
 0xc35   :  { %v813_v60 = vmul.f32 %v1702_v31, %v811_v30  ;;  %vm818_vm13 = vweird.f32 %v1702_v31 }
 0xc36   :  { %vm819_vm15 = vmor %vm817_vm14, %vm818_vm13  ;;  %vm1348_vm13 = vcmask 1045509  }
 0xc37   :  { %v814_v32 = vsub.f32 1.0, %v813_v60 }
 0xc39   :  { %v815_v38 = vmul.f32 %v1702_v31, %v814_v32 }
 0xc3b   :  { %v816_v7 = vadd.f32 %v1702_v31, %v815_v38  ;;  %v2475_v38 = vld [vmem:[%s2664_s9 + $0x38] sm:$0xff] }
 0xc3d   :  { %v820_v40 = vsel %vm819_vm15, %v1702_v31, %v816_v7  ;;  %v2486_v7 = vld [vmem:[%s2664_s9 + $0x18] sm:$0xff] }
 0xc3e   :  { %v825_v42 = vsel %vm822_vm2, %v824_v39, %v820_v40  ;;  %v2492_v39 = vld [vmem:[%s2664_s9 + $0x8] sm:$0xff] }
 0xc3f   :  { %v838_v56 = vmul.f32 %v836_v41, %v825_v42  ;;  %v845_v61 = vsub.f32 1.0, %v825_v42  ;;  %v851_v63 = vmul.f32 %v825_v42, %v2413_v17 }
 0xc41   :  { %840 = vrot.lane.b32.xlu2 %v838_v56, %s1938_s27 }
 0xc9b   :  { %v841_v57 = vpop.permute.xlu2 %840 }
 0xc9c   :  { %v843_v58 = vadd.f32 %v841_v57, %v805_v52 }
 0xc9e   :  { %1703 = vtanh.f32 %v843_v58 }
 0xca4   :  { %v1704_v59 = vpop.eup %1703 }
 0xca5   :  { %847 = vrot.lane.b32.xlu2 %v1704_v59, %s1940_s11 }
 0xcff   :  { %v848_v62 = vpop.permute.xlu2 %847 }
 0xd00   :  { %v850_v2 = vmul.f32 %v848_v62, %v845_v61 }
 0xd02   :  { %v2447_v9 = vadd.f32 %v851_v63, %v850_v2  ;;  %v1672_v2 = vld [vmem:[%s2667_s12] ss:$0 sm:$0xff] }
 0xd04   :  { %854 = vrot.lane.b32.xlu1 %v2447_v9, %s1940_s11 }
 0xd76   :  { %v855_v12 = vpop.permute.xlu1 %854 }
 0xd77   :  { %857 = vst.msk [vmem:[#allocation3 + $0x2] sm:$0x1] %vm125_vm0, %v855_v12  ;;  %1637 = vmatmul.msk.f32.vlgmr.msrb.gmra.mxu0 %vm156_vm1, %v855_v12  ;;  %1638 = vmatmul.msk.f32.vlgmr.msrb.gmra.mxu1 %vm156_vm1, %v855_v12  ;;  %v1156_v12 = vld [vmem:[%s2657_s2 + $0x68] sm:$0xff] }
 0xd78   :  { %1098 = vmatpush.msrb.mxu0 %v2221_v45  ;;  %1118 = vmatpush.msrb.mxu1 %v2475_v38 }
 0xd7a   :  { %1099 = vmatpush.msrb.mxu0 %v2235_v48  ;;  %1119 = vmatpush.msrb.mxu1 %v2480_v6 }
 0xd7c   :  { %1100 = vmatpush.msrb.mxu0 %v2250_v51  ;;  %1120 = vmatpush.msrb.mxu1 %v2486_v7 }
 0xd7e   :  { %1101 = vmatpush.msrb.mxu0 %v2262_v53  ;;  %1121 = vmatpush.msrb.mxu1 %v2492_v39 }
 0xdf4   :  { %v885_v14 = vpop.f32.mrf.mxu0  ;;  %v905_v15 = vpop.f32.mrf.mxu1 }
 0xdf5   :  { %v1051_v16 = vadd.f32 %v1049_v13, %v885_v14  ;;  %v909_v17 = vrot.slane %v905_v15, 5  ;;  %v1155_v13 = vld [vmem:[%s2657_s2 + $0x60] sm:$0xff] }
 0xdf7   :  { %1053 = vrot.lane.b32.xlu0 %v1051_v16, %s1938_s27  ;;  %v911_v18 = vadd.f32 %v909_v17, %v2111_v19  ;;  %v1154_v16 = vld [vmem:[%s2657_s2 + $0x58] sm:$0xff] }
 0xdf9   :  { %v913_v11 = vsel %vm912_vm3, %v911_v18, -inf }
 0xdfa   :  { %914 = vmax.xlane.f32.xlu2 %v913_v11 }
 0xe69   :  { %v1054_v29 = vpop.permute.xlu0 %1053 }
 0xe6d   :  { %v915_v20 = vpop.xlane.xlu2 %914 }
 0xe6e   :  { %v916_v45 = vsub.f32 %v911_v18, %v915_v20 }
 0xe70   :  { %v917_v21 = vmul.f32 1.442695, %v916_v45 }
 0xe72   :  { %1705 = vpow2.f32 %v917_v21 }
 0xe78   :  { %v1706_v48 = vpop.eup %1705 }
 0xe79   :  { %v919_v51 = vsel %vm912_vm3, %v1706_v48, 0.0 }
 0xe7a   :  { %920 = vadd.xlane.f32.xlu1 %v919_v51  ;;  %v1152_v51 = vld [vmem:[%s2657_s2 + $0x48] sm:$0xff] }
 0xeed   :  { %v921_v53 = vpop.xlane.xlu1 %920 }
 0xeee   :  { %1707 = vrcp.f32 %v921_v53  ;;  %v1151_v53 = vld [vmem:[%s2657_s2 + $0x40] sm:$0xff] }
 0xef4   :  { %v1708_v33 = vpop.eup %1707 }
 0xef5   :  { %v923_v34 = vmul.f32 %v1708_v33, %v1706_v48  ;;  %v1153_v48 = vld [vmem:[%s2657_s2 + $0x50] sm:$0xff]  ;;  %v1150_v33 = vld [vmem:[%s2657_s2 + $0x38] sm:$0xff] }
 0xef7   :  { %924 = vst [vmem:[#allocation15] sm:$0x8] %v923_v34  ;;  %v942_v0 = vrot.slane %v923_v34, 3  ;;  %v1149_v34 = vld [vmem:[%s2657_s2 + $0x30] sm:$0xff] }
 0xef9   :  { %960 = vmatmul.f32.vlgmr.msra.gmra.mxu2 %v942_v0  ;;  %v1148_v0 = vld [vmem:[%s2657_s2 + $0x28] sm:$0xff] }
 0xf7c   :  { %v961_v35 = vpop.f32.mrf.mxu2 }
 0xf7d   :  { %1639 = vmatmul.msk.f32.vlgmr.msra.gmra.mxu0 %vm156_vm1, %v961_v35  ;;  %v1147_v35 = vld [vmem:[%s2657_s2 + $0x20] sm:$0xff] }
 0xffa   :  { %v988_v1 = vpop.f32.mrf.mxu0 }
 0xffb   :  { %v992_v3 = vrot.slane %v988_v1, 5  ;;  %v1146_v1 = vld [vmem:[%s2657_s2 + $0x18] sm:$0xff] }
 0xffd   :  { %v994_v36 = vadd.f32 %v992_v3, %v2335_v10  ;;  %v1145_v3 = vld [vmem:[%s2657_s2 + $0x10] sm:$0xff] }
 0xfff   :  { %v995_v5 = vmax.f32 %v994_v36, 0.0  ;;  %v1144_v36 = vld [vmem:[%s2657_s2 + $0x8] sm:$0xff] }
0x1001   :  { %v1002_v37 = vrot.slane %v995_v5, 3  ;;  %v1143_v5 = vld [vmem:[%s2657_s2] sm:$0xff] }
0x1003   :  { %1640 = vmatmul.msk.f32.vlgmr.msra.gmra.mxu1 %vm156_vm1, %v1002_v37  ;;  %v2566_v37 = vld [vmem:[%s2662_s7 + $0x18] sm:$0xff] }
0x1004   :  { %1201 = vmatpush.msra.mxu0 %v2566_v37 }
0x1080   :  { %v1022_v44 = vpop.f32.mrf.mxu1 }
0x1081   :  { %v1023_v46 = vadd.f32 %v1022_v44, %v1000_v43  ;;  %v2571_v43 = vld [vmem:[%s2662_s7 + $0x10] sm:$0xff]  ;;  %v2577_v44 = vld [vmem:[%s2662_s7 + $0x8] sm:$0xff] }
0x1082   :  { %1202 = vmatpush.msra.mxu0 %v2571_v43 }
0x1083   :  { %v1025_v49 = vadd.f32 %v1023_v46, %v885_v14 }
0x1084   :  { %1203 = vmatpush.msra.mxu0 %v2577_v44 }
0x1085   :  { %v1641_v55 = vmul.f32 -1.442695, %v1025_v49 }
0x1087   :  { %1709 = vpow2.f32 %v1641_v55 }
0x108d   :  { %v1710_v22 = vpop.eup %1709 }
0x108e   :  { %v1029_v23 = vadd.f32 1.0, %v1710_v22 }
0x1090   :  { %1711 = vrcp.f32 %v1029_v23  ;;  %v1041_v27 = vand.u32 2147483648, %v1029_v23  ;;  %v1039_v50 = vand.u32 2147483647, %v1029_v23  ;;  %vm1035_vm5 = vweird.f32 %v1029_v23 }
0x1092   :  { %v1042_v54 = vor.u32 1.1754944e-38, %v1041_v27  ;;  %vm1040_vm7 = vcmp.eq.f32.partialorder %v1039_v50, 8.507059e+37  ;;  %v1215_v27 = vld [vmem:[#allocation11 + $0x8] sm:$0xff] }
0x1096   :  { %v1712_v24 = vpop.eup %1711 }
0x1097   :  { %v1031_v25 = vmul.f32 %v1712_v24, %v1029_v23  ;;  %vm1036_vm4 = vweird.f32 %v1712_v24 }
0x1098   :  { %vm1037_vm6 = vmor %vm1035_vm5, %vm1036_vm4  ;;  %vm1545_vm4 = vcmask 1045504  }
0x1099   :  { %v1032_v26 = vsub.f32 1.0, %v1031_v25  ;;  %v1217_v25 = vld [vmem:[#allocation11 + $0x18] sm:$0xff] }
0x109a   :  { %1235 = vmatpush.msra.mxu1 %v1217_v25 }
0x109b   :  { %v1033_v47 = vmul.f32 %v1712_v24, %v1032_v26  ;;  %v1216_v26 = vld [vmem:[#allocation11 + $0x10] sm:$0xff] }
0x109c   :  { %1236 = vmatpush.msra.mxu1 %v1216_v26 }
0x109d   :  { %v1034_v52 = vadd.f32 %v1712_v24, %v1033_v47  ;;  %v1214_v47 = vld [vmem:[#allocation11] sm:$0xff] }
0x109e   :  { %1237 = vmatpush.msra.mxu1 %v1215_v27 }
0x109f   :  { %v1038_v28 = vsel %vm1037_vm6, %v1712_v24, %v1034_v52 }
0x10a0   :  { %v1043_v30 = vsel %vm1040_vm7, %v1042_v54, %v1038_v28  ;;  %1238 = vmatpush.msra.mxu1 %v1214_v47 }
0x10a1   :  { %v1056_v31 = vmul.f32 %v1054_v29, %v1043_v30  ;;  %v1063_v40 = vsub.f32 1.0, %v1043_v30  ;;  %v1069_v42 = vmul.f32 %v1043_v30, %v2447_v9  ;;  %v1158_v9 = vld [vmem:[%s2657_s2 + $0x78] sm:$0xff]  ;;  %v1218_v30 = vld [vmem:[%s2679_s20] sm:$0x1]  ;;  %s1943_s2 = smov [#allocation14]  }
0x10a2   :  { %1162 = vmatpush.msrb.mxu3 %v1158_v9  ;;  %1380 = vmatpush.msrb.mxu2 %v1158_v9  ;;  %s1564_s13 = sshll.u32 %s1943_s2, 4  ;;  %s1565_s13 = int_to_ptr.vmem [resolvable:$true] %s1564_s13 }
0x10a3   :  { %1058 = vrot.lane.b32.xlu0 %v1056_v31, %s1938_s27 }
0x10a4   :  { %1163 = vmatpush.msrb.mxu3 %v1157_v8  ;;  %1381 = vmatpush.msrb.mxu2 %v1157_v8 }
0x10a6   :  { %1164 = vmatpush.msrb.mxu3 %v1156_v12  ;;  %1382 = vmatpush.msrb.mxu2 %v1156_v12 }
0x10a8   :  { %1165 = vmatpush.msrb.mxu3 %v1155_v13  ;;  %1383 = vmatpush.msrb.mxu2 %v1155_v13  ;;  %v1300_v13 = vld [vmem:[%s2664_s9 + $0x30] sm:$0xff] }
0x10aa   :  { %1166 = vmatpush.msrb.mxu3 %v1154_v16  ;;  %1384 = vmatpush.msrb.mxu2 %v1154_v16  ;;  %v1294_v16 = vld [vmem:[%s2664_s9] sm:$0xff] }
0x10ac   :  { %1167 = vmatpush.msrb.mxu3 %v1153_v48  ;;  %1385 = vmatpush.msrb.mxu2 %v1153_v48 }
0x10ae   :  { %1168 = vmatpush.msrb.mxu3 %v1152_v51  ;;  %1386 = vmatpush.msrb.mxu2 %v1152_v51 }
0x10b0   :  { %1169 = vmatpush.msrb.mxu3 %v1151_v53  ;;  %1387 = vmatpush.msrb.mxu2 %v1151_v53 }
0x10b2   :  { %1170 = vmatpush.msrb.mxu3 %v1150_v33  ;;  %1388 = vmatpush.msrb.mxu2 %v1150_v33 }
0x10b4   :  { %1171 = vmatpush.msrb.mxu3 %v1149_v34  ;;  %1389 = vmatpush.msrb.mxu2 %v1149_v34 }
0x10b6   :  { %1172 = vmatpush.msrb.mxu3 %v1148_v0  ;;  %1390 = vmatpush.msrb.mxu2 %v1148_v0 }
0x10b8   :  { %1173 = vmatpush.msrb.mxu3 %v1147_v35  ;;  %1391 = vmatpush.msrb.mxu2 %v1147_v35 }
0x10ba   :  { %1174 = vmatpush.msrb.mxu3 %v1146_v1  ;;  %1392 = vmatpush.msrb.mxu2 %v1146_v1 }
0x10bc   :  { %1175 = vmatpush.msrb.mxu3 %v1145_v3  ;;  %1393 = vmatpush.msrb.mxu2 %v1145_v3 }
0x10be   :  { %1176 = vmatpush.msrb.mxu3 %v1144_v36  ;;  %1394 = vmatpush.msrb.mxu2 %v1144_v36 }
0x10c0   :  { %1177 = vmatpush.msrb.mxu3 %v1143_v5  ;;  %1395 = vmatpush.msrb.mxu2 %v1143_v5 }
0x1115   :  { %v1059_v60 = vpop.permute.xlu0 %1058 }
0x1116   :  { %v1061_v32 = vadd.f32 %v1059_v60, %v1023_v46  ;;  %v2583_v46 = vld [vmem:[%s2662_s7] sm:$0xff] }
0x1117   :  { %1204 = vmatpush.msra.mxu0 %v2583_v46 }
0x1118   :  { %1713 = vtanh.f32 %v1061_v32 }
0x111e   :  { %v1714_v4 = vpop.eup %1713 }
0x111f   :  { %1065 = vrot.lane.b32.xlu0 %v1714_v4, %s1940_s11 }
0x1191   :  { %v1066_v41 = vpop.permute.xlu0 %1065 }
0x1192   :  { %v1068_v56 = vmul.f32 %v1066_v41, %v1063_v40 }
0x1194   :  { %v2497_v57 = vadd.f32 %v1069_v42, %v1068_v56 }
0x1196   :  { %1072 = vrot.lane.b32.xlu2 %v2497_v57, %s1940_s11 }
0x11f0   :  { %v1073_v58 = vpop.permute.xlu2 %1072 }
0x11f1   :  { %1075 = vst.msk [vmem:[#allocation3 + $0x3] sm:$0x1] %vm125_vm0, %v1073_v58  ;;  %1642 = vmatmul.msk.f32.vlgmr.msrb.gmra.mxu0 %vm156_vm1, %v1073_v58  ;;  %1643 = vmatmul.msk.f32.vlgmr.msrb.gmra.mxu1 %vm156_vm1, %v1073_v58 }
0x11f2   :  { %1336 = vmatpush.msrb.mxu1 %v2475_v38  ;;  %1316 = vmatpush.msrb.mxu0 %v1300_v13 }
0x11f4   :  { %1337 = vmatpush.msrb.mxu1 %v2480_v6 }
0x11f6   :  { %1338 = vmatpush.msrb.mxu1 %v2486_v7 }
0x11f8   :  { %1339 = vmatpush.msrb.mxu1 %v2492_v39 }
0x126e   :  { %v1123_v59 = vpop.f32.mrf.mxu1  ;;  %v2526_v20 = vpop.f32.mrf.mxu0 }
0x126f   :  { %v1127_v61 = vrot.slane %v1123_v59, 4 }
0x1271   :  { %v1129_v62 = vadd.f32 %v1127_v61, %v2111_v19 }
0x1273   :  { %v1131_v63 = vsel %vm1130_vm8, %v1129_v62, -inf }
0x1274   :  { %1132 = vmax.xlane.f32.xlu1 %v1131_v63 }
0x128d   :  { %1266 = vrot.lane.b32.xlu1 %v1672_v2, %s1938_s27 }
0x12e7   :  { %v1133_v14 = vpop.xlane.xlu1 %1132 }
0x12e8   :  { %v1134_v15 = vsub.f32 %v1129_v62, %v1133_v14  ;;  %v1298_v14 = vld [vmem:[%s2664_s9 + $0x20] sm:$0xff] }
0x12e9   :  { %1317 = vmatpush.msrb.mxu0 %v1298_v14 }
0x12ea   :  { %v1135_v17 = vmul.f32 1.442695, %v1134_v15  ;;  %v1296_v15 = vld [vmem:[%s2664_s9 + $0x10] sm:$0xff] }
0x12eb   :  { %1318 = vmatpush.msrb.mxu0 %v1296_v15  ;;  %v1674_v15 = vld [vmem:[%s2669_s14] ss:$0 sm:$0xff]  ;;  %s1942_s14 = smov [#allocation17]  }
0x12ec   :  { %1715 = vpow2.f32 %v1135_v17  ;;  %s1586_s3 = sshll.u32 %s1942_s14, 4  ;;  %s1587_s3 = int_to_ptr.vmem [resolvable:$true] %s1586_s3 }
0x12ed   :  { %1319 = vmatpush.msrb.mxu0 %v1294_v16 }
0x12f2   :  { %v1716_v18 = vpop.eup %1715 }
0x12f3   :  { %v1137_v11 = vsel %vm1130_vm8, %v1716_v18, 0.0 }
0x12f4   :  { %1138 = vadd.xlane.f32.xlu0 %v1137_v11 }
0x12ff   :  { %v1267_v45 = vpop.permute.xlu1 %1266 }
0x1300   :  { %v1269_v21 = vadd.f32 %v1267_v45, %v2526_v20 }
0x1302   :  { %1271 = vrot.lane.b32.xlu2 %v1269_v21, %s1938_s27  ;;  %v1673_v21 = vld [vmem:[%s2667_s12] ss:$0 sm:$0xff] }
0x1308   :  { %1484 = vrot.lane.b32.xlu0 %v1673_v21, %s1938_s27 }
0x135c   :  { %v1272_v62 = vpop.permute.xlu2 %1271 }
0x1367   :  { %v1139_v49 = vpop.xlane.xlu0 %1138 }
0x1368   :  { %1717 = vrcp.f32 %v1139_v49 }
0x136e   :  { %v1718_v55 = vpop.eup %1717 }
0x136f   :  { %v1141_v22 = vmul.f32 %v1718_v55, %v1716_v18 }
0x1371   :  { %1142 = vst [vmem:[#allocation15] sm:$0x10] %v1141_v22  ;;  %v1160_v23 = vrot.slane %v1141_v22, 4 }
0x1373   :  { %1178 = vmatmul.f32.vlgmr.msrb.gmra.mxu3 %v1160_v23 }
0x13f6   :  { %v1179_v24 = vpop.f32.mrf.mxu3 }
0x13f7   :  { %1644 = vmatmul.msk.f32.vlgmr.msra.gmra.mxu0 %vm156_vm1, %v1179_v24 }
0x13f8   :  { %1419 = vmatpush.msra.mxu0 %v2566_v37 }
0x13fa   :  { %1420 = vmatpush.msra.mxu0 %v2571_v43 }
0x13fc   :  { %1421 = vmatpush.msra.mxu0 %v2577_v44 }
0x13fe   :  { %1422 = vmatpush.msra.mxu0 %v2583_v46 }
0x1474   :  { %v1206_v50 = vpop.f32.mrf.mxu0 }
0x1475   :  { %v1210_v52 = vrot.slane %v1206_v50, 4 }
0x1477   :  { %v1212_v54 = vadd.f32 %v1210_v52, %v2335_v10 }
0x1479   :  { %v1213_v28 = vmax.f32 %v1212_v54, 0.0 }
0x147b   :  { %v1220_v29 = vrot.slane %v1213_v28, 4 }
0x147d   :  { %1645 = vmatmul.msk.f32.vlgmr.msra.gmra.mxu1 %vm156_vm1, %v1220_v29 }
0x147e   :  { %1453 = vmatpush.msra.mxu1 %v1217_v25 }
0x1480   :  { %1454 = vmatpush.msra.mxu1 %v1216_v26  ;;  %v1436_v26 = vld [vmem:[%s2679_s20] sm:$0x1] }
0x1482   :  { %1455 = vmatpush.msra.mxu1 %v1215_v27 }
0x1484   :  { %1456 = vmatpush.msra.mxu1 %v1214_v47 }
0x14fa   :  { %v1240_v31 = vpop.f32.mrf.mxu1 }
0x14fb   :  { %v1241_v60 = vadd.f32 %v1240_v31, %v1218_v30 }
0x14fd   :  { %v1243_v32 = vadd.f32 %v1241_v60, %v2526_v20 }
0x14ff   :  { %v1646_v4 = vmul.f32 -1.442695, %v1243_v32 }
0x1501   :  { %1719 = vpow2.f32 %v1646_v4 }
0x1507   :  { %v1720_v38 = vpop.eup %1719 }
0x1508   :  { %v1247_v6 = vadd.f32 1.0, %v1720_v38 }
0x150a   :  { %1721 = vrcp.f32 %v1247_v6  ;;  %v1259_v41 = vand.u32 2147483648, %v1247_v6  ;;  %v1257_v56 = vand.u32 2147483647, %v1247_v6  ;;  %vm1253_vm10 = vweird.f32 %v1247_v6 }
0x150c   :  { %v1260_v59 = vor.u32 1.1754944e-38, %v1259_v41  ;;  %vm1258_vm12 = vcmp.eq.f32.partialorder %v1257_v56, 8.507059e+37 }
0x1510   :  { %v1722_v7 = vpop.eup %1721 }
0x1511   :  { %v1249_v39 = vmul.f32 %v1722_v7, %v1247_v6  ;;  %vm1254_vm9 = vweird.f32 %v1722_v7 }
0x1512   :  { %vm1255_vm11 = vmor %vm1253_vm10, %vm1254_vm9 }
0x1513   :  { %v1250_v40 = vsub.f32 1.0, %v1249_v39 }
0x1515   :  { %v1251_v42 = vmul.f32 %v1722_v7, %v1250_v40 }
0x1517   :  { %v1252_v58 = vadd.f32 %v1722_v7, %v1251_v42 }
0x1519   :  { %v1256_v61 = vsel %vm1255_vm11, %v1722_v7, %v1252_v58 }
0x151a   :  { %v1261_v63 = vsel %vm1258_vm12, %v1260_v59, %v1256_v61 }
0x151b   :  { %v1274_v2 = vmul.f32 %v1272_v62, %v1261_v63  ;;  %v1281_v17 = vsub.f32 1.0, %v1261_v63  ;;  %v1287_v11 = vmul.f32 %v1261_v63, %v2497_v57  ;;  %v1485_v57 = vpop.permute.xlu0 %1484 }
0x151d   :  { %1276 = vrot.lane.b32.xlu2 %v1274_v2, %s1938_s27  ;;  %v1517_v2 = vld [vmem:[#allocation12 + $0x18] sm:$0xff] }
0x1577   :  { %v1277_v9 = vpop.permute.xlu2 %1276 }
0x1578   :  { %v1279_v8 = vadd.f32 %v1277_v9, %v1241_v60  ;;  %v1516_v9 = vld [vmem:[#allocation12 + $0x10] sm:$0xff] }
0x157a   :  { %1723 = vtanh.f32 %v1279_v8  ;;  %v1515_v8 = vld [vmem:[#allocation12 + $0x8] sm:$0xff] }
0x1580   :  { %v1724_v12 = vpop.eup %1723 }
0x1581   :  { %1283 = vrot.lane.b32.xlu1 %v1724_v12, %s1940_s11  ;;  %v1514_v12 = vld [vmem:[#allocation12] sm:$0xff] }
0x15f3   :  { %v1284_v18 = vpop.permute.xlu1 %1283 }
0x15f4   :  { %v1286_v20 = vmul.f32 %v1284_v18, %v1281_v17 }
0x15f6   :  { %v2617_v45 = vadd.f32 %v1287_v11, %v1286_v20 }
0x15f8   :  { %1290 = vrot.lane.b32.xlu2 %v2617_v45, %s1940_s11 }
0x1652   :  { %v1291_v48 = vpop.permute.xlu2 %1290 }
0x1653   :  { %1293 = vst.msk [vmem:[#allocation3 + $0x4] sm:$0x1] %vm125_vm0, %v1291_v48  ;;  %1647 = vmatmul.msk.f32.vlgmr.msrb.gmra.mxu0 %vm156_vm1, %v1291_v48  ;;  %1648 = vmatmul.msk.f32.vlgmr.msrb.gmra.mxu1 %vm156_vm1, %v1291_v48 }
0x1654   :  { %1537 = vmatpush.msrb.mxu0 %v1517_v2 }
0x1656   :  { %1538 = vmatpush.msrb.mxu0 %v1516_v9 }
0x1658   :  { %1539 = vmatpush.msrb.mxu0 %v1515_v8 }
0x165a   :  { %1540 = vmatpush.msrb.mxu0 %v1514_v12 }
0x16d0   :  { %v1321_v51 = vpop.f32.mrf.mxu0  ;;  %v1341_v53 = vpop.f32.mrf.mxu1 }
0x16d1   :  { %v1487_v33 = vadd.f32 %v1485_v57, %v1321_v51  ;;  %v1345_v34 = vrot.slane %v1341_v53, 3 }
0x16d3   :  { %1489 = vrot.lane.b32.xlu0 %v1487_v33, %s1938_s27  ;;  %v1347_v0 = vadd.f32 %v1345_v34, %v2111_v19 }
0x16d5   :  { %v1349_v35 = vsel %vm1348_vm13, %v1347_v0, -inf }
0x16d6   :  { %1350 = vmax.xlane.f32.xlu1 %v1349_v35 }
0x1745   :  { %v1490_v7 = vpop.permute.xlu0 %1489 }
0x1749   :  { %v1351_v1 = vpop.xlane.xlu1 %1350 }
0x174a   :  { %v1352_v3 = vsub.f32 %v1347_v0, %v1351_v1 }
0x174c   :  { %v1353_v36 = vmul.f32 1.442695, %v1352_v3 }
0x174e   :  { %1725 = vpow2.f32 %v1353_v36 }
0x1754   :  { %v1726_v5 = vpop.eup %1725 }
0x1755   :  { %v1355_v37 = vsel %vm1348_vm13, %v1726_v5, 0.0 }
0x1756   :  { %1356 = vadd.xlane.f32.xlu2 %v1355_v37 }
0x17c9   :  { %v1357_v43 = vpop.xlane.xlu2 %1356 }
0x17ca   :  { %1727 = vrcp.f32 %v1357_v43 }
0x17d0   :  { %v1728_v44 = vpop.eup %1727 }
0x17d1   :  { %v1359_v46 = vmul.f32 %v1728_v44, %v1726_v5 }
0x17d3   :  { %1360 = vst [vmem:[#allocation15] sm:$0x20] %v1359_v46  ;;  %v1378_v49 = vrot.slane %v1359_v46, 5 }
0x17d5   :  { %1396 = vmatmul.f32.vlgmr.msrb.gmra.mxu2 %v1378_v49 }
0x1858   :  { %v1397_v55 = vpop.f32.mrf.mxu2 }
0x1859   :  { %1649 = vmatmul.msk.f32.vlgmr.msra.gmra.mxu0 %vm156_vm1, %v1397_v55 }
0x18d6   :  { %v1424_v19 = vpop.f32.mrf.mxu0 }
0x18d7   :  { %v1428_v22 = vrot.slane %v1424_v19, 3 }
0x18d9   :  { %v1430_v23 = vadd.f32 %v1428_v22, %v2335_v10 }
0x18db   :  { %v1431_v24 = vmax.f32 %v1430_v23, 0.0 }
0x18dd   :  { %v1438_v25 = vrot.slane %v1431_v24, 5 }
0x18df   :  { %1650 = vmatmul.msk.f32.vlgmr.msra.gmra.mxu1 %vm156_vm1, %v1438_v25 }
0x195c   :  { %v1458_v27 = vpop.f32.mrf.mxu1 }
0x195d   :  { %v1459_v47 = vadd.f32 %v1458_v27, %v1436_v26 }
0x195f   :  { %v1461_v50 = vadd.f32 %v1459_v47, %v1321_v51 }
0x1961   :  { %v1651_v52 = vmul.f32 -1.442695, %v1461_v50 }
0x1963   :  { %1729 = vpow2.f32 %v1651_v52 }
0x1969   :  { %v1730_v54 = vpop.eup %1729 }
0x196a   :  { %v1465_v28 = vadd.f32 1.0, %v1730_v54 }
0x196c   :  { %1731 = vrcp.f32 %v1465_v28  ;;  %v1477_v10 = vand.u32 2147483648, %v1465_v28  ;;  %v1475_v32 = vand.u32 2147483647, %v1465_v28  ;;  %vm1471_vm15 = vweird.f32 %v1465_v28 }
0x196e   :  { %v1478_v38 = vor.u32 1.1754944e-38, %v1477_v10  ;;  %vm1476_vm3 = vcmp.eq.f32.partialorder %v1475_v32, 8.507059e+37 }
0x1972   :  { %v1732_v29 = vpop.eup %1731 }
0x1973   :  { %v1467_v30 = vmul.f32 %v1732_v29, %v1465_v28  ;;  %vm1472_vm14 = vweird.f32 %v1732_v29 }
0x1974   :  { %vm1473_vm2 = vmor %vm1471_vm15, %vm1472_vm14 }
0x1975   :  { %v1468_v31 = vsub.f32 1.0, %v1467_v30 }
0x1977   :  { %v1469_v60 = vmul.f32 %v1732_v29, %v1468_v31 }
0x1979   :  { %v1470_v4 = vadd.f32 %v1732_v29, %v1469_v60 }
0x197b   :  { %v1474_v6 = vsel %vm1473_vm2, %v1732_v29, %v1470_v4 }
0x197c   :  { %v1479_v39 = vsel %vm1476_vm3, %v1478_v38, %v1474_v6 }
0x197d   :  { %v1492_v40 = vmul.f32 %v1490_v7, %v1479_v39  ;;  %v1499_v58 = vsub.f32 1.0, %v1479_v39  ;;  %v1505_v61 = vmul.f32 %v1479_v39, %v2617_v45 }
0x197f   :  { %1494 = vrot.lane.b32.xlu0 %v1492_v40, %s1938_s27 }
0x19f1   :  { %v1495_v41 = vpop.permute.xlu0 %1494 }
0x19f2   :  { %v1497_v42 = vadd.f32 %v1495_v41, %v1459_v47 }
0x19f4   :  { %1733 = vtanh.f32 %v1497_v42 }
0x19fa   :  { %v1734_v56 = vpop.eup %1733 }
0x19fb   :  { %1501 = vrot.lane.b32.xlu0 %v1734_v56, %s1940_s11 }
0x1a6d   :  { %v1502_v59 = vpop.permute.xlu0 %1501 }
0x1a6e   :  { %v1504_v62 = vmul.f32 %v1502_v59, %v1499_v58 }
0x1a70   :  { %v1506_v63 = vadd.f32 %v1505_v61, %v1504_v62 }
0x1a72   :  { %1508 = vrot.lane.b32.xlu1 %v1506_v63, %s1940_s11  ;;  %s1941_s11 = smov [#allocation15]  }
0x1a73   :  { %s1575_s21 = sshll.u32 %s1941_s11, 4  ;;  %s1576_s21 = int_to_ptr.vmem [resolvable:$true] %s1575_s21 }
0x1a74   :  { %1580 = dma.vmem_to_hbm [thread:$0]  %s1576_s21, 128, %s1578_s4, [#allocation16]  }
0x1ae4   :  { %v1509_v13 = vpop.permute.xlu1 %1508 }
0x1ae5   :  { %1511 = vst.msk [vmem:[#allocation3 + $0x5] sm:$0x1] %vm125_vm0, %v1509_v13 }
0x1ae6   :  { %1512 = vst.msk [vmem:[#allocation17] sm:$0x1] %vm125_vm0, %v1509_v13 }
0x1ae7   :  { %1591 = dma.vmem_to_hbm [thread:$0]  %s1587_s3, 16, %s1589_s1, [#allocation16]  }
0x1aec   :  { %v1513_v14 = vld [vmem:[#allocation3] sm:$0x3f] }
0x1aed   :  { %1652 = vmatmul.msk.f32.vlgmr.msrb.gmra.mxu0 %vm156_vm1, %v1513_v14 }
0x1b6a   :  { %v1542_v16 = vpop.f32.mrf.mxu0 }
0x1b6b   :  { %v1543_v17 = vadd.f32 %v1674_v15, %v1542_v16 }
0x1b6d   :  { %v1546_v18 = vsel %vm1545_vm4, %v1543_v17, -inf }
0x1b6e   :  { %1547 = vmax.xlane.f32.xlu2 %v1546_v18 }
0x1be1   :  { %v1548_v11 = vpop.xlane.xlu2 %1547 }
0x1be2   :  { %v1549_v20 = vsub.f32 %v1543_v17, %v1548_v11 }
0x1be4   :  { %v1550_v45 = vmul.f32 1.442695, %v1549_v20 }
0x1be6   :  { %1735 = vpow2.f32 %v1550_v45 }
0x1bec   :  { %v1736_v21 = vpop.eup %1735 }
0x1bed   :  { %v1552_v48 = vsel %vm1545_vm4, %v1736_v21, 0.0 }
0x1bee   :  { %1553 = vadd.xlane.f32.xlu0 %v1552_v48 }
0x1c61   :  { %v1554_v57 = vpop.xlane.xlu0 %1553 }
0x1c62   :  { %1737 = vlog2.f32 %v1554_v57 }
0x1c68   :  { %v1738_v51 = vpop.eup %1737 }
0x1c69   :  { %v1556_v53 = vmul.f32 0.6931472, %v1738_v51 }
0x1c6b   :  { %v1557_v33 = vsub.f32 %v1549_v20, %v1556_v53 }
0x1c6d   :  { %1558 = vst [vmem:[#allocation14] sm:$0x3f] %v1557_v33 }
0x1c6e   :  { %1569 = dma.vmem_to_hbm [thread:$0]  %s1565_s13, 128, %s1567_s23, [#allocation8]  }
0x1c6f   :  { %1927 = dma.done.wait [#allocation8], 128  }
0x1c70   :  { %1928 = vsyncadd [#allocation8], 4294967168 }
0x1c71   :  { %1929 = dma.done.wait [#allocation16], 144  }
0x1c72   :  { %1930 = vsyncadd [#allocation16], 4294967152 }
0x1c73   :  { %1604 = vsyncpa [#allocation7], 1 }
0x1c74   :  { %1605 = vsyncpa [#allocation10], 1 }
0x1c75   :  { %1606 = vsyncpa [#allocation13], 1 }
0x1c76   :  { %1607 = vsyncpa [#allocation8], 1 }
0x1c77   :  { %1608 = vsyncpa [#allocation16], 1 }

</bundles_post_ra>
